<compile_context>
chip_gen: v7x
topology: tpu7x:2x2x1
jax: 0.10.0
libtpu: 0.0.40
codegen_flags: <defaults>
</compile_context>

<pallas_src>
import functools
import math

import jax
import jax.numpy as jnp
from jax.experimental import pallas as pl
from jax.experimental.pallas import tpu as pltpu


# ----------------------------------------------------------------------------
# Fused kernel: multi-layer LSTM + flatten + fc1(relu) + fc2(leaky_relu).
# ----------------------------------------------------------------------------
def lstm_hn_kernel(x_ref, *refs, T, B, H, num_layers):
    """Fully fused LSTM_hn forward.

    refs layout (after x_ref):
      per layer l: w_ih_t (D_in, 4H), w_hh_t (H, 4H), bias (1, 4H)
      then fc1_w_t (T*H, H), fc1_b (1, H), fc2_w_t (H, O), fc2_b (1, O)
      then out_ref (B, O)
    """
    w_refs = refs[: 3 * num_layers]
    fc1w_ref, fc1b_ref, fc2w_ref, fc2b_ref, out_ref = refs[3 * num_layers:]

    # x rows are ordered (t * B + b): time-major flattening done in wrapper.
    x = x_ref[...]

    hs = []
    for layer in range(num_layers):
        wih_ref, whh_ref, b_ref = w_refs[3 * layer: 3 * layer + 3]

        # Hoisted input projection: one (T*B, D_in) @ (D_in, 4H) matmul for
        # the whole sequence (removes one serialized MXU op per time step).
        gx = (
            jnp.dot(x, wih_ref[...], preferred_element_type=jnp.float32)
            + b_ref[...]
        )
        whh = whh_ref[...]

        h = jnp.zeros((B, H), jnp.float32)
        c = jnp.zeros((B, H), jnp.float32)
        hs = []
        # T is small and static: unroll the recurrence in-kernel so the LLO
        # scheduler can overlap EUP activations with the next step's MXU push.
        for t in range(T):
            gates = gx[t * B:(t + 1) * B, :] + jnp.dot(
                h, whh, preferred_element_type=jnp.float32)
            # PyTorch gate order [i, f, g, o].
            i_g = jax.nn.sigmoid(gates[:, 0 * H:1 * H])
            f_g = jax.nn.sigmoid(gates[:, 1 * H:2 * H])
            g_g = jnp.tanh(gates[:, 2 * H:3 * H])
            o_g = jax.nn.sigmoid(gates[:, 3 * H:4 * H])
            c = f_g * c + i_g * g_g
            h = o_g * jnp.tanh(c)
            hs.append(h)

        if layer + 1 < num_layers:
            # Next layer's (T*B, H) time-major input.
            x = jnp.concatenate(hs, axis=0)

    # Lane-dense (B, T*H) slab == out.contiguous().view(B, T*H) in PyTorch.
    new_out = jnp.concatenate(hs, axis=1)

    # fc1 + relu
    y = (
        jnp.dot(new_out, fc1w_ref[...], preferred_element_type=jnp.float32)
        + fc1b_ref[...]
    )
    y = jnp.maximum(y, 0.0)

    # fc2 + leaky_relu (PyTorch default negative_slope = 0.01)
    z = (
        jnp.dot(y, fc2w_ref[...], preferred_element_type=jnp.float32)
        + fc2b_ref[...]
    )
    out_ref[...] = jnp.where(z >= 0.0, z, 0.01 * z).astype(out_ref.dtype)


def _full_spec(shape):
    # Whole-array VMEM block; no grid, so index_map takes no args.
    return pl.BlockSpec(tuple(shape), lambda: (0,) * len(shape))


def lstm_hn_forward(sig1, params):
    """sig1: (B, T, D) batch_first float32. Returns (B, osize)."""
    B, T, D = sig1.shape
    L = len(params["lstm_layers"])
    H = params["lstm_layers"][0][1].shape[0]
    O = params["fc2_w_t"].shape[1]

    # Cheap XLA-side time-major flatten; rows ordered t*B + b.
    x2d = jnp.transpose(sig1, (1, 0, 2)).reshape(T * B, D)

    inputs = [x2d]
    in_specs = [_full_spec((T * B, D))]
    for (w_ih_t, w_hh_t, bias) in params["lstm_layers"]:
        d_in = w_ih_t.shape[0]
        inputs += [w_ih_t, w_hh_t, bias.reshape(1, 4 * H)]
        in_specs += [
            _full_spec((d_in, 4 * H)),
            _full_spec((H, 4 * H)),
            _full_spec((1, 4 * H)),
        ]
    inputs += [
        params["fc1_w_t"], params["fc1_b"].reshape(1, -1),
        params["fc2_w_t"], params["fc2_b"].reshape(1, -1),
    ]
    in_specs += [
        _full_spec(params["fc1_w_t"].shape),
        _full_spec((1, params["fc1_b"].shape[0])),
        _full_spec(params["fc2_w_t"].shape),
        _full_spec((1, params["fc2_b"].shape[0])),
    ]

    kernel = functools.partial(lstm_hn_kernel, T=T, B=B, H=H, num_layers=L)

    return pl.pallas_call(
        kernel,
        out_shape=jax.ShapeDtypeStruct((B, O), jnp.float32),
        in_specs=in_specs,
        out_specs=_full_spec((B, O)),
        compiler_params=pltpu.CompilerParams(
            vmem_limit_bytes=32 * 1024 * 1024,
        ),
    )(*inputs)


# ----------------------------------------------------------------------------
# Pure-JAX reference for verification.
# ----------------------------------------------------------------------------
def lstm_hn_reference(sig1, params):
    x = sig1  # (B, T, D)
    for (w_ih_t, w_hh_t, bias) in params["lstm_layers"]:
        B, T, _ = x.shape
        H = w_hh_t.shape[0]
        h = jnp.zeros((B, H), jnp.float32)
        c = jnp.zeros((B, H), jnp.float32)

        def step(carry, xt):
            h, c = carry
            gates = xt @ w_ih_t + h @ w_hh_t + bias
            i = jax.nn.sigmoid(gates[:, 0 * H:1 * H])
            f = jax.nn.sigmoid(gates[:, 1 * H:2 * H])
            g = jnp.tanh(gates[:, 2 * H:3 * H])
            o = jax.nn.sigmoid(gates[:, 3 * H:4 * H])
            c = f * c + i * g
            h = o * jnp.tanh(c)
            return (h, c), h

        _, hs = jax.lax.scan(step, (h, c), jnp.transpose(x, (1, 0, 2)))
        x = jnp.transpose(hs, (1, 0, 2))
    B, T, H = x.shape
    new_out = x.reshape(B, T * H)
    y = jnp.maximum(new_out @ params["fc1_w_t"] + params["fc1_b"], 0.0)
    z = y @ params["fc2_w_t"] + params["fc2_b"]
    return jnp.where(z >= 0.0, z, 0.01 * z)


# ----------------------------------------------------------------------------
# Deterministic parameter init (PyTorch-style uniform(-1/sqrt(H), 1/sqrt(H))).
# ----------------------------------------------------------------------------
def init_params(key, D, H, L, T, osize):
    params = {"lstm_layers": []}
    k = 1.0 / math.sqrt(H)
    for layer in range(L):
        d_in = D if layer == 0 else H
        key, k1, k2, k3, k4 = jax.random.split(key, 5)
        w_ih = jax.random.uniform(k1, (4 * H, d_in), jnp.float32, -k, k)
        w_hh = jax.random.uniform(k2, (4 * H, H), jnp.float32, -k, k)
        b_ih = jax.random.uniform(k3, (4 * H,), jnp.float32, -k, k)
        b_hh = jax.random.uniform(k4, (4 * H,), jnp.float32, -k, k)
        params["lstm_layers"].append((w_ih.T, w_hh.T, b_ih + b_hh))

    kf1 = 1.0 / math.sqrt(T * H)
    key, k1, k2 = jax.random.split(key, 3)
    fc1_w = jax.random.uniform(k1, (H, T * H), jnp.float32, -kf1, kf1)
    fc1_b = jax.random.uniform(k2, (H,), jnp.float32, -kf1, kf1)

    kf2 = 1.0 / math.sqrt(H)
    key, k1, k2 = jax.random.split(key, 3)
    fc2_w = jax.random.uniform(k1, (osize, H), jnp.float32, -kf2, kf2)
    fc2_b = jax.random.uniform(k2, (osize,), jnp.float32, -kf2, kf2)

    params["fc1_w_t"] = fc1_w.T
    params["fc1_b"] = fc1_b
    params["fc2_w_t"] = fc2_w.T
    params["fc2_b"] = fc2_b
    return params


if __name__ == "__main__":
    B, T, D = 2, 8, 16      # batch, seq len (param.lstm_l), input size (param.lstm_s)
    H, L = 32, 2            # param.hsize, param.hlayer (scaled down)
    OSIZE = 64              # param.osize (scaled down)

    key = jax.random.PRNGKey(0)
    key, kx, kp = jax.random.split(key, 3)
    sig1 = jax.random.normal(kx, (B, T, D), jnp.float32)
    params = init_params(kp, D, H, L, T, OSIZE)

    out = lstm_hn_forward(sig1, params)
    out = jax.block_until_ready(out)

    ref = jax.block_until_ready(lstm_hn_reference(sig1, params))
    assert out.shape == (B, OSIZE), out.shape
    assert jnp.allclose(out, ref, atol=1e-4, rtol=1e-4), (
        float(jnp.max(jnp.abs(out - ref)))
    )
    print("KERNEL_OK")
</pallas_src>

<mosaic_0001>
module attributes {stable_mosaic.version = 11 : i64} {
  func.func @lstm_hn_kernel(%arg0: memref<16x16xf32, #tpu.memory_space<vmem>>, %arg1: memref<16x128xf32, #tpu.memory_space<vmem>>, %arg2: memref<32x128xf32, #tpu.memory_space<vmem>>, %arg3: memref<1x128xf32, #tpu.memory_space<vmem>>, %arg4: memref<32x128xf32, #tpu.memory_space<vmem>>, %arg5: memref<32x128xf32, #tpu.memory_space<vmem>>, %arg6: memref<1x128xf32, #tpu.memory_space<vmem>>, %arg7: memref<256x32xf32, #tpu.memory_space<vmem>>, %arg8: memref<1x32xf32, #tpu.memory_space<vmem>>, %arg9: memref<32x64xf32, #tpu.memory_space<vmem>>, %arg10: memref<1x64xf32, #tpu.memory_space<vmem>>, %arg11: memref<2x64xf32, #tpu.memory_space<vmem>>) attributes {dimension_semantics = [], scalar_prefetch = 0 : i64, scratch_operands = 0 : i64, tpu.core_type = #tpu.core_type<tc>} {
    %c0 = arith.constant 0 : index
    %c0_0 = arith.constant 0 : index
    %0 = vector.load %arg0[%c0, %c0_0] : memref<16x16xf32, #tpu.memory_space<vmem>>, vector<16x16xf32>
    %c0_1 = arith.constant 0 : index
    %c0_2 = arith.constant 0 : index
    %1 = vector.load %arg1[%c0_1, %c0_2] : memref<16x128xf32, #tpu.memory_space<vmem>>, vector<16x128xf32>
    %cst = arith.constant dense<0.000000e+00> : vector<16x128xf32>
    %2 = tpu.matmul %0, %1, %cst {dimension_numbers = #tpu.dot_dimension_numbers<[1], [0], [0], [1], [0, 0, 1, 1], [], []>} : vector<16x16xf32>, vector<16x128xf32>, vector<16x128xf32> -> vector<16x128xf32>
    %c0_3 = arith.constant 0 : index
    %c0_4 = arith.constant 0 : index
    %3 = vector.load %arg3[%c0_3, %c0_4] : memref<1x128xf32, #tpu.memory_space<vmem>>, vector<1x128xf32>
    %4 = vector.broadcast %3 : vector<1x128xf32> to vector<16x128xf32>
    %5 = arith.addf %2, %4 : vector<16x128xf32>
    %c0_5 = arith.constant 0 : index
    %c0_6 = arith.constant 0 : index
    %6 = vector.load %arg2[%c0_5, %c0_6] : memref<32x128xf32, #tpu.memory_space<vmem>>, vector<32x128xf32>
    %cst_7 = arith.constant 0.000000e+00 : f32
    %7 = vector.broadcast %cst_7 : f32 to vector<2x32xf32>
    %cst_8 = arith.constant 0.000000e+00 : f32
    %8 = vector.broadcast %cst_8 : f32 to vector<2x32xf32>
    %9 = vector.extract_strided_slice %5 {offsets = [0, 0], sizes = [2, 128], strides = [1, 1]} : vector<16x128xf32> to vector<2x128xf32>
    %cst_9 = arith.constant dense<0.000000e+00> : vector<2x128xf32>
    %10 = tpu.matmul %7, %6, %cst_9 {dimension_numbers = #tpu.dot_dimension_numbers<[1], [0], [0], [1], [0, 0, 1, 1], [], []>} : vector<2x32xf32>, vector<32x128xf32>, vector<2x128xf32> -> vector<2x128xf32>
    %11 = arith.addf %9, %10 : vector<2x128xf32>
    %12 = vector.extract_strided_slice %11 {offsets = [0, 0], sizes = [2, 32], strides = [1, 1]} : vector<2x128xf32> to vector<2x32xf32>
    %13 = arith.negf %12 : vector<2x32xf32>
    %14 = math.exp %13 : vector<2x32xf32>
    %cst_10 = arith.constant 1.000000e+00 : f32
    %15 = vector.broadcast %cst_10 : f32 to vector<2x32xf32>
    %16 = arith.addf %15, %14 : vector<2x32xf32>
    %17 = arith.divf %15, %16 : vector<2x32xf32>
    %18 = vector.extract_strided_slice %11 {offsets = [0, 32], sizes = [2, 32], strides = [1, 1]} : vector<2x128xf32> to vector<2x32xf32>
    %19 = arith.negf %18 : vector<2x32xf32>
    %20 = math.exp %19 : vector<2x32xf32>
    %cst_11 = arith.constant 1.000000e+00 : f32
    %21 = vector.broadcast %cst_11 : f32 to vector<2x32xf32>
    %22 = arith.addf %21, %20 : vector<2x32xf32>
    %23 = arith.divf %21, %22 : vector<2x32xf32>
    %24 = vector.extract_strided_slice %11 {offsets = [0, 64], sizes = [2, 32], strides = [1, 1]} : vector<2x128xf32> to vector<2x32xf32>
    %25 = math.tanh %24 : vector<2x32xf32>
    %26 = vector.extract_strided_slice %11 {offsets = [0, 96], sizes = [2, 32], strides = [1, 1]} : vector<2x128xf32> to vector<2x32xf32>
    %27 = arith.negf %26 : vector<2x32xf32>
    %28 = math.exp %27 : vector<2x32xf32>
    %cst_12 = arith.constant 1.000000e+00 : f32
    %29 = vector.broadcast %cst_12 : f32 to vector<2x32xf32>
    %30 = arith.addf %29, %28 : vector<2x32xf32>
    %31 = arith.divf %29, %30 : vector<2x32xf32>
    %32 = arith.mulf %23, %8 : vector<2x32xf32>
    %33 = arith.mulf %17, %25 : vector<2x32xf32>
    %34 = arith.addf %32, %33 : vector<2x32xf32>
    %35 = math.tanh %34 : vector<2x32xf32>
    %36 = arith.mulf %31, %35 : vector<2x32xf32>
    %37 = vector.extract_strided_slice %5 {offsets = [2, 0], sizes = [2, 128], strides = [1, 1]} : vector<16x128xf32> to vector<2x128xf32>
    %cst_13 = arith.constant dense<0.000000e+00> : vector<2x128xf32>
    %38 = tpu.matmul %36, %6, %cst_13 {dimension_numbers = #tpu.dot_dimension_numbers<[1], [0], [0], [1], [0, 0, 1, 1], [], []>} : vector<2x32xf32>, vector<32x128xf32>, vector<2x128xf32> -> vector<2x128xf32>
    %39 = arith.addf %37, %38 : vector<2x128xf32>
    %40 = vector.extract_strided_slice %39 {offsets = [0, 0], sizes = [2, 32], strides = [1, 1]} : vector<2x128xf32> to vector<2x32xf32>
    %41 = arith.negf %40 : vector<2x32xf32>
    %42 = math.exp %41 : vector<2x32xf32>
    %cst_14 = arith.constant 1.000000e+00 : f32
    %43 = vector.broadcast %cst_14 : f32 to vector<2x32xf32>
    %44 = arith.addf %43, %42 : vector<2x32xf32>
    %45 = arith.divf %43, %44 : vector<2x32xf32>
    %46 = vector.extract_strided_slice %39 {offsets = [0, 32], sizes = [2, 32], strides = [1, 1]} : vector<2x128xf32> to vector<2x32xf32>
    %47 = arith.negf %46 : vector<2x32xf32>
    %48 = math.exp %47 : vector<2x32xf32>
    %cst_15 = arith.constant 1.000000e+00 : f32
    %49 = vector.broadcast %cst_15 : f32 to vector<2x32xf32>
    %50 = arith.addf %49, %48 : vector<2x32xf32>
    %51 = arith.divf %49, %50 : vector<2x32xf32>
    %52 = vector.extract_strided_slice %39 {offsets = [0, 64], sizes = [2, 32], strides = [1, 1]} : vector<2x128xf32> to vector<2x32xf32>
    %53 = math.tanh %52 : vector<2x32xf32>
    %54 = vector.extract_strided_slice %39 {offsets = [0, 96], sizes = [2, 32], strides = [1, 1]} : vector<2x128xf32> to vector<2x32xf32>
    %55 = arith.negf %54 : vector<2x32xf32>
    %56 = math.exp %55 : vector<2x32xf32>
    %cst_16 = arith.constant 1.000000e+00 : f32
    %57 = vector.broadcast %cst_16 : f32 to vector<2x32xf32>
    %58 = arith.addf %57, %56 : vector<2x32xf32>
    %59 = arith.divf %57, %58 : vector<2x32xf32>
    %60 = arith.mulf %51, %34 : vector<2x32xf32>
    %61 = arith.mulf %45, %53 : vector<2x32xf32>
    %62 = arith.addf %60, %61 : vector<2x32xf32>
    %63 = math.tanh %62 : vector<2x32xf32>
    %64 = arith.mulf %59, %63 : vector<2x32xf32>
    %65 = vector.extract_strided_slice %5 {offsets = [4, 0], sizes = [2, 128], strides = [1, 1]} : vector<16x128xf32> to vector<2x128xf32>
    %cst_17 = arith.constant dense<0.000000e+00> : vector<2x128xf32>
    %66 = tpu.matmul %64, %6, %cst_17 {dimension_numbers = #tpu.dot_dimension_numbers<[1], [0], [0], [1], [0, 0, 1, 1], [], []>} : vector<2x32xf32>, vector<32x128xf32>, vector<2x128xf32> -> vector<2x128xf32>
    %67 = arith.addf %65, %66 : vector<2x128xf32>
    %68 = vector.extract_strided_slice %67 {offsets = [0, 0], sizes = [2, 32], strides = [1, 1]} : vector<2x128xf32> to vector<2x32xf32>
    %69 = arith.negf %68 : vector<2x32xf32>
    %70 = math.exp %69 : vector<2x32xf32>
    %cst_18 = arith.constant 1.000000e+00 : f32
    %71 = vector.broadcast %cst_18 : f32 to vector<2x32xf32>
    %72 = arith.addf %71, %70 : vector<2x32xf32>
    %73 = arith.divf %71, %72 : vector<2x32xf32>
    %74 = vector.extract_strided_slice %67 {offsets = [0, 32], sizes = [2, 32], strides = [1, 1]} : vector<2x128xf32> to vector<2x32xf32>
    %75 = arith.negf %74 : vector<2x32xf32>
    %76 = math.exp %75 : vector<2x32xf32>
    %cst_19 = arith.constant 1.000000e+00 : f32
    %77 = vector.broadcast %cst_19 : f32 to vector<2x32xf32>
    %78 = arith.addf %77, %76 : vector<2x32xf32>
    %79 = arith.divf %77, %78 : vector<2x32xf32>
    %80 = vector.extract_strided_slice %67 {offsets = [0, 64], sizes = [2, 32], strides = [1, 1]} : vector<2x128xf32> to vector<2x32xf32>
    %81 = math.tanh %80 : vector<2x32xf32>
    %82 = vector.extract_strided_slice %67 {offsets = [0, 96], sizes = [2, 32], strides = [1, 1]} : vector<2x128xf32> to vector<2x32xf32>
    %83 = arith.negf %82 : vector<2x32xf32>
    %84 = math.exp %83 : vector<2x32xf32>
    %cst_20 = arith.constant 1.000000e+00 : f32
    %85 = vector.broadcast %cst_20 : f32 to vector<2x32xf32>
    %86 = arith.addf %85, %84 : vector<2x32xf32>
    %87 = arith.divf %85, %86 : vector<2x32xf32>
    %88 = arith.mulf %79, %62 : vector<2x32xf32>
    %89 = arith.mulf %73, %81 : vector<2x32xf32>
    %90 = arith.addf %88, %89 : vector<2x32xf32>
    %91 = math.tanh %90 : vector<2x32xf32>
    %92 = arith.mulf %87, %91 : vector<2x32xf32>
    %93 = vector.extract_strided_slice %5 {offsets = [6, 0], sizes = [2, 128], strides = [1, 1]} : vector<16x128xf32> to vector<2x128xf32>
    %cst_21 = arith.constant dense<0.000000e+00> : vector<2x128xf32>
    %94 = tpu.matmul %92, %6, %cst_21 {dimension_numbers = #tpu.dot_dimension_numbers<[1], [0], [0], [1], [0, 0, 1, 1], [], []>} : vector<2x32xf32>, vector<32x128xf32>, vector<2x128xf32> -> vector<2x128xf32>
    %95 = arith.addf %93, %94 : vector<2x128xf32>
    %96 = vector.extract_strided_slice %95 {offsets = [0, 0], sizes = [2, 32], strides = [1, 1]} : vector<2x128xf32> to vector<2x32xf32>
    %97 = arith.negf %96 : vector<2x32xf32>
    %98 = math.exp %97 : vector<2x32xf32>
    %cst_22 = arith.constant 1.000000e+00 : f32
    %99 = vector.broadcast %cst_22 : f32 to vector<2x32xf32>
    %100 = arith.addf %99, %98 : vector<2x32xf32>
    %101 = arith.divf %99, %100 : vector<2x32xf32>
    %102 = vector.extract_strided_slice %95 {offsets = [0, 32], sizes = [2, 32], strides = [1, 1]} : vector<2x128xf32> to vector<2x32xf32>
    %103 = arith.negf %102 : vector<2x32xf32>
    %104 = math.exp %103 : vector<2x32xf32>
    %cst_23 = arith.constant 1.000000e+00 : f32
    %105 = vector.broadcast %cst_23 : f32 to vector<2x32xf32>
    %106 = arith.addf %105, %104 : vector<2x32xf32>
    %107 = arith.divf %105, %106 : vector<2x32xf32>
    %108 = vector.extract_strided_slice %95 {offsets = [0, 64], sizes = [2, 32], strides = [1, 1]} : vector<2x128xf32> to vector<2x32xf32>
    %109 = math.tanh %108 : vector<2x32xf32>
    %110 = vector.extract_strided_slice %95 {offsets = [0, 96], sizes = [2, 32], strides = [1, 1]} : vector<2x128xf32> to vector<2x32xf32>
    %111 = arith.negf %110 : vector<2x32xf32>
    %112 = math.exp %111 : vector<2x32xf32>
    %cst_24 = arith.constant 1.000000e+00 : f32
    %113 = vector.broadcast %cst_24 : f32 to vector<2x32xf32>
    %114 = arith.addf %113, %112 : vector<2x32xf32>
    %115 = arith.divf %113, %114 : vector<2x32xf32>
    %116 = arith.mulf %107, %90 : vector<2x32xf32>
    %117 = arith.mulf %101, %109 : vector<2x32xf32>
    %118 = arith.addf %116, %117 : vector<2x32xf32>
    %119 = math.tanh %118 : vector<2x32xf32>
    %120 = arith.mulf %115, %119 : vector<2x32xf32>
    %121 = vector.extract_strided_slice %5 {offsets = [8, 0], sizes = [2, 128], strides = [1, 1]} : vector<16x128xf32> to vector<2x128xf32>
    %cst_25 = arith.constant dense<0.000000e+00> : vector<2x128xf32>
    %122 = tpu.matmul %120, %6, %cst_25 {dimension_numbers = #tpu.dot_dimension_numbers<[1], [0], [0], [1], [0, 0, 1, 1], [], []>} : vector<2x32xf32>, vector<32x128xf32>, vector<2x128xf32> -> vector<2x128xf32>
    %123 = arith.addf %121, %122 : vector<2x128xf32>
    %124 = vector.extract_strided_slice %123 {offsets = [0, 0], sizes = [2, 32], strides = [1, 1]} : vector<2x128xf32> to vector<2x32xf32>
    %125 = arith.negf %124 : vector<2x32xf32>
    %126 = math.exp %125 : vector<2x32xf32>
    %cst_26 = arith.constant 1.000000e+00 : f32
    %127 = vector.broadcast %cst_26 : f32 to vector<2x32xf32>
    %128 = arith.addf %127, %126 : vector<2x32xf32>
    %129 = arith.divf %127, %128 : vector<2x32xf32>
    %130 = vector.extract_strided_slice %123 {offsets = [0, 32], sizes = [2, 32], strides = [1, 1]} : vector<2x128xf32> to vector<2x32xf32>
    %131 = arith.negf %130 : vector<2x32xf32>
    %132 = math.exp %131 : vector<2x32xf32>
    %cst_27 = arith.constant 1.000000e+00 : f32
    %133 = vector.broadcast %cst_27 : f32 to vector<2x32xf32>
    %134 = arith.addf %133, %132 : vector<2x32xf32>
    %135 = arith.divf %133, %134 : vector<2x32xf32>
    %136 = vector.extract_strided_slice %123 {offsets = [0, 64], sizes = [2, 32], strides = [1, 1]} : vector<2x128xf32> to vector<2x32xf32>
    %137 = math.tanh %136 : vector<2x32xf32>
    %138 = vector.extract_strided_slice %123 {offsets = [0, 96], sizes = [2, 32], strides = [1, 1]} : vector<2x128xf32> to vector<2x32xf32>
    %139 = arith.negf %138 : vector<2x32xf32>
    %140 = math.exp %139 : vector<2x32xf32>
    %cst_28 = arith.constant 1.000000e+00 : f32
    %141 = vector.broadcast %cst_28 : f32 to vector<2x32xf32>
    %142 = arith.addf %141, %140 : vector<2x32xf32>
    %143 = arith.divf %141, %142 : vector<2x32xf32>
    %144 = arith.mulf %135, %118 : vector<2x32xf32>
    %145 = arith.mulf %129, %137 : vector<2x32xf32>
    %146 = arith.addf %144, %145 : vector<2x32xf32>
    %147 = math.tanh %146 : vector<2x32xf32>
    %148 = arith.mulf %143, %147 : vector<2x32xf32>
    %149 = vector.extract_strided_slice %5 {offsets = [10, 0], sizes = [2, 128], strides = [1, 1]} : vector<16x128xf32> to vector<2x128xf32>
    %cst_29 = arith.constant dense<0.000000e+00> : vector<2x128xf32>
    %150 = tpu.matmul %148, %6, %cst_29 {dimension_numbers = #tpu.dot_dimension_numbers<[1], [0], [0], [1], [0, 0, 1, 1], [], []>} : vector<2x32xf32>, vector<32x128xf32>, vector<2x128xf32> -> vector<2x128xf32>
    %151 = arith.addf %149, %150 : vector<2x128xf32>
    %152 = vector.extract_strided_slice %151 {offsets = [0, 0], sizes = [2, 32], strides = [1, 1]} : vector<2x128xf32> to vector<2x32xf32>
    %153 = arith.negf %152 : vector<2x32xf32>
    %154 = math.exp %153 : vector<2x32xf32>
    %cst_30 = arith.constant 1.000000e+00 : f32
    %155 = vector.broadcast %cst_30 : f32 to vector<2x32xf32>
    %156 = arith.addf %155, %154 : vector<2x32xf32>
    %157 = arith.divf %155, %156 : vector<2x32xf32>
    %158 = vector.extract_strided_slice %151 {offsets = [0, 32], sizes = [2, 32], strides = [1, 1]} : vector<2x128xf32> to vector<2x32xf32>
    %159 = arith.negf %158 : vector<2x32xf32>
    %160 = math.exp %159 : vector<2x32xf32>
    %cst_31 = arith.constant 1.000000e+00 : f32
    %161 = vector.broadcast %cst_31 : f32 to vector<2x32xf32>
    %162 = arith.addf %161, %160 : vector<2x32xf32>
    %163 = arith.divf %161, %162 : vector<2x32xf32>
    %164 = vector.extract_strided_slice %151 {offsets = [0, 64], sizes = [2, 32], strides = [1, 1]} : vector<2x128xf32> to vector<2x32xf32>
    %165 = math.tanh %164 : vector<2x32xf32>
    %166 = vector.extract_strided_slice %151 {offsets = [0, 96], sizes = [2, 32], strides = [1, 1]} : vector<2x128xf32> to vector<2x32xf32>
    %167 = arith.negf %166 : vector<2x32xf32>
    %168 = math.exp %167 : vector<2x32xf32>
    %cst_32 = arith.constant 1.000000e+00 : f32
    %169 = vector.broadcast %cst_32 : f32 to vector<2x32xf32>
    %170 = arith.addf %169, %168 : vector<2x32xf32>
    %171 = arith.divf %169, %170 : vector<2x32xf32>
    %172 = arith.mulf %163, %146 : vector<2x32xf32>
    %173 = arith.mulf %157, %165 : vector<2x32xf32>
    %174 = arith.addf %172, %173 : vector<2x32xf32>
    %175 = math.tanh %174 : vector<2x32xf32>
    %176 = arith.mulf %171, %175 : vector<2x32xf32>
    %177 = vector.extract_strided_slice %5 {offsets = [12, 0], sizes = [2, 128], strides = [1, 1]} : vector<16x128xf32> to vector<2x128xf32>
    %cst_33 = arith.constant dense<0.000000e+00> : vector<2x128xf32>
    %178 = tpu.matmul %176, %6, %cst_33 {dimension_numbers = #tpu.dot_dimension_numbers<[1], [0], [0], [1], [0, 0, 1, 1], [], []>} : vector<2x32xf32>, vector<32x128xf32>, vector<2x128xf32> -> vector<2x128xf32>
    %179 = arith.addf %177, %178 : vector<2x128xf32>
    %180 = vector.extract_strided_slice %179 {offsets = [0, 0], sizes = [2, 32], strides = [1, 1]} : vector<2x128xf32> to vector<2x32xf32>
    %181 = arith.negf %180 : vector<2x32xf32>
    %182 = math.exp %181 : vector<2x32xf32>
    %cst_34 = arith.constant 1.000000e+00 : f32
    %183 = vector.broadcast %cst_34 : f32 to vector<2x32xf32>
    %184 = arith.addf %183, %182 : vector<2x32xf32>
    %185 = arith.divf %183, %184 : vector<2x32xf32>
    %186 = vector.extract_strided_slice %179 {offsets = [0, 32], sizes = [2, 32], strides = [1, 1]} : vector<2x128xf32> to vector<2x32xf32>
    %187 = arith.negf %186 : vector<2x32xf32>
    %188 = math.exp %187 : vector<2x32xf32>
    %cst_35 = arith.constant 1.000000e+00 : f32
    %189 = vector.broadcast %cst_35 : f32 to vector<2x32xf32>
    %190 = arith.addf %189, %188 : vector<2x32xf32>
    %191 = arith.divf %189, %190 : vector<2x32xf32>
    %192 = vector.extract_strided_slice %179 {offsets = [0, 64], sizes = [2, 32], strides = [1, 1]} : vector<2x128xf32> to vector<2x32xf32>
    %193 = math.tanh %192 : vector<2x32xf32>
    %194 = vector.extract_strided_slice %179 {offsets = [0, 96], sizes = [2, 32], strides = [1, 1]} : vector<2x128xf32> to vector<2x32xf32>
    %195 = arith.negf %194 : vector<2x32xf32>
    %196 = math.exp %195 : vector<2x32xf32>
    %cst_36 = arith.constant 1.000000e+00 : f32
    %197 = vector.broadcast %cst_36 : f32 to vector<2x32xf32>
    %198 = arith.addf %197, %196 : vector<2x32xf32>
    %199 = arith.divf %197, %198 : vector<2x32xf32>
    %200 = arith.mulf %191, %174 : vector<2x32xf32>
    %201 = arith.mulf %185, %193 : vector<2x32xf32>
    %202 = arith.addf %200, %201 : vector<2x32xf32>
    %203 = math.tanh %202 : vector<2x32xf32>
    %204 = arith.mulf %199, %203 : vector<2x32xf32>
    %205 = vector.extract_strided_slice %5 {offsets = [14, 0], sizes = [2, 128], strides = [1, 1]} : vector<16x128xf32> to vector<2x128xf32>
    %cst_37 = arith.constant dense<0.000000e+00> : vector<2x128xf32>
    %206 = tpu.matmul %204, %6, %cst_37 {dimension_numbers = #tpu.dot_dimension_numbers<[1], [0], [0], [1], [0, 0, 1, 1], [], []>} : vector<2x32xf32>, vector<32x128xf32>, vector<2x128xf32> -> vector<2x128xf32>
    %207 = arith.addf %205, %206 : vector<2x128xf32>
    %208 = vector.extract_strided_slice %207 {offsets = [0, 0], sizes = [2, 32], strides = [1, 1]} : vector<2x128xf32> to vector<2x32xf32>
    %209 = arith.negf %208 : vector<2x32xf32>
    %210 = math.exp %209 : vector<2x32xf32>
    %cst_38 = arith.constant 1.000000e+00 : f32
    %211 = vector.broadcast %cst_38 : f32 to vector<2x32xf32>
    %212 = arith.addf %211, %210 : vector<2x32xf32>
    %213 = arith.divf %211, %212 : vector<2x32xf32>
    %214 = vector.extract_strided_slice %207 {offsets = [0, 32], sizes = [2, 32], strides = [1, 1]} : vector<2x128xf32> to vector<2x32xf32>
    %215 = arith.negf %214 : vector<2x32xf32>
    %216 = math.exp %215 : vector<2x32xf32>
    %cst_39 = arith.constant 1.000000e+00 : f32
    %217 = vector.broadcast %cst_39 : f32 to vector<2x32xf32>
    %218 = arith.addf %217, %216 : vector<2x32xf32>
    %219 = arith.divf %217, %218 : vector<2x32xf32>
    %220 = vector.extract_strided_slice %207 {offsets = [0, 64], sizes = [2, 32], strides = [1, 1]} : vector<2x128xf32> to vector<2x32xf32>
    %221 = math.tanh %220 : vector<2x32xf32>
    %222 = vector.extract_strided_slice %207 {offsets = [0, 96], sizes = [2, 32], strides = [1, 1]} : vector<2x128xf32> to vector<2x32xf32>
    %223 = arith.negf %222 : vector<2x32xf32>
    %224 = math.exp %223 : vector<2x32xf32>
    %cst_40 = arith.constant 1.000000e+00 : f32
    %225 = vector.broadcast %cst_40 : f32 to vector<2x32xf32>
    %226 = arith.addf %225, %224 : vector<2x32xf32>
    %227 = arith.divf %225, %226 : vector<2x32xf32>
    %228 = arith.mulf %219, %202 : vector<2x32xf32>
    %229 = arith.mulf %213, %221 : vector<2x32xf32>
    %230 = arith.addf %228, %229 : vector<2x32xf32>
    %231 = math.tanh %230 : vector<2x32xf32>
    %232 = arith.mulf %227, %231 : vector<2x32xf32>
    %233 = tpu.concatenate %36, %64, %92, %120, %148, %176, %204, %232 in 0 : vector<2x32xf32>, vector<2x32xf32>, vector<2x32xf32>, vector<2x32xf32>, vector<2x32xf32>, vector<2x32xf32>, vector<2x32xf32>, vector<2x32xf32> -> vector<16x32xf32>
    %c0_41 = arith.constant 0 : index
    %c0_42 = arith.constant 0 : index
    %234 = vector.load %arg4[%c0_41, %c0_42] : memref<32x128xf32, #tpu.memory_space<vmem>>, vector<32x128xf32>
    %cst_43 = arith.constant dense<0.000000e+00> : vector<16x128xf32>
    %235 = tpu.matmul %233, %234, %cst_43 {dimension_numbers = #tpu.dot_dimension_numbers<[1], [0], [0], [1], [0, 0, 1, 1], [], []>} : vector<16x32xf32>, vector<32x128xf32>, vector<16x128xf32> -> vector<16x128xf32>
    %c0_44 = arith.constant 0 : index
    %c0_45 = arith.constant 0 : index
    %236 = vector.load %arg6[%c0_44, %c0_45] : memref<1x128xf32, #tpu.memory_space<vmem>>, vector<1x128xf32>
    %237 = vector.broadcast %236 : vector<1x128xf32> to vector<16x128xf32>
    %238 = arith.addf %235, %237 : vector<16x128xf32>
    %c0_46 = arith.constant 0 : index
    %c0_47 = arith.constant 0 : index
    %239 = vector.load %arg5[%c0_46, %c0_47] : memref<32x128xf32, #tpu.memory_space<vmem>>, vector<32x128xf32>
    %cst_48 = arith.constant 0.000000e+00 : f32
    %240 = vector.broadcast %cst_48 : f32 to vector<2x32xf32>
    %cst_49 = arith.constant 0.000000e+00 : f32
    %241 = vector.broadcast %cst_49 : f32 to vector<2x32xf32>
    %242 = vector.extract_strided_slice %238 {offsets = [0, 0], sizes = [2, 128], strides = [1, 1]} : vector<16x128xf32> to vector<2x128xf32>
    %cst_50 = arith.constant dense<0.000000e+00> : vector<2x128xf32>
    %243 = tpu.matmul %240, %239, %cst_50 {dimension_numbers = #tpu.dot_dimension_numbers<[1], [0], [0], [1], [0, 0, 1, 1], [], []>} : vector<2x32xf32>, vector<32x128xf32>, vector<2x128xf32> -> vector<2x128xf32>
    %244 = arith.addf %242, %243 : vector<2x128xf32>
    %245 = vector.extract_strided_slice %244 {offsets = [0, 0], sizes = [2, 32], strides = [1, 1]} : vector<2x128xf32> to vector<2x32xf32>
    %246 = arith.negf %245 : vector<2x32xf32>
    %247 = math.exp %246 : vector<2x32xf32>
    %cst_51 = arith.constant 1.000000e+00 : f32
    %248 = vector.broadcast %cst_51 : f32 to vector<2x32xf32>
    %249 = arith.addf %248, %247 : vector<2x32xf32>
    %250 = arith.divf %248, %249 : vector<2x32xf32>
    %251 = vector.extract_strided_slice %244 {offsets = [0, 32], sizes = [2, 32], strides = [1, 1]} : vector<2x128xf32> to vector<2x32xf32>
    %252 = arith.negf %251 : vector<2x32xf32>
    %253 = math.exp %252 : vector<2x32xf32>
    %cst_52 = arith.constant 1.000000e+00 : f32
    %254 = vector.broadcast %cst_52 : f32 to vector<2x32xf32>
    %255 = arith.addf %254, %253 : vector<2x32xf32>
    %256 = arith.divf %254, %255 : vector<2x32xf32>
    %257 = vector.extract_strided_slice %244 {offsets = [0, 64], sizes = [2, 32], strides = [1, 1]} : vector<2x128xf32> to vector<2x32xf32>
    %258 = math.tanh %257 : vector<2x32xf32>
    %259 = vector.extract_strided_slice %244 {offsets = [0, 96], sizes = [2, 32], strides = [1, 1]} : vector<2x128xf32> to vector<2x32xf32>
    %260 = arith.negf %259 : vector<2x32xf32>
    %261 = math.exp %260 : vector<2x32xf32>
    %cst_53 = arith.constant 1.000000e+00 : f32
    %262 = vector.broadcast %cst_53 : f32 to vector<2x32xf32>
    %263 = arith.addf %262, %261 : vector<2x32xf32>
    %264 = arith.divf %262, %263 : vector<2x32xf32>
    %265 = arith.mulf %256, %241 : vector<2x32xf32>
    %266 = arith.mulf %250, %258 : vector<2x32xf32>
    %267 = arith.addf %265, %266 : vector<2x32xf32>
    %268 = math.tanh %267 : vector<2x32xf32>
    %269 = arith.mulf %264, %268 : vector<2x32xf32>
    %270 = vector.extract_strided_slice %238 {offsets = [2, 0], sizes = [2, 128], strides = [1, 1]} : vector<16x128xf32> to vector<2x128xf32>
    %cst_54 = arith.constant dense<0.000000e+00> : vector<2x128xf32>
    %271 = tpu.matmul %269, %239, %cst_54 {dimension_numbers = #tpu.dot_dimension_numbers<[1], [0], [0], [1], [0, 0, 1, 1], [], []>} : vector<2x32xf32>, vector<32x128xf32>, vector<2x128xf32> -> vector<2x128xf32>
    %272 = arith.addf %270, %271 : vector<2x128xf32>
    %273 = vector.extract_strided_slice %272 {offsets = [0, 0], sizes = [2, 32], strides = [1, 1]} : vector<2x128xf32> to vector<2x32xf32>
    %274 = arith.negf %273 : vector<2x32xf32>
    %275 = math.exp %274 : vector<2x32xf32>
    %cst_55 = arith.constant 1.000000e+00 : f32
    %276 = vector.broadcast %cst_55 : f32 to vector<2x32xf32>
    %277 = arith.addf %276, %275 : vector<2x32xf32>
    %278 = arith.divf %276, %277 : vector<2x32xf32>
    %279 = vector.extract_strided_slice %272 {offsets = [0, 32], sizes = [2, 32], strides = [1, 1]} : vector<2x128xf32> to vector<2x32xf32>
    %280 = arith.negf %279 : vector<2x32xf32>
    %281 = math.exp %280 : vector<2x32xf32>
    %cst_56 = arith.constant 1.000000e+00 : f32
    %282 = vector.broadcast %cst_56 : f32 to vector<2x32xf32>
    %283 = arith.addf %282, %281 : vector<2x32xf32>
    %284 = arith.divf %282, %283 : vector<2x32xf32>
    %285 = vector.extract_strided_slice %272 {offsets = [0, 64], sizes = [2, 32], strides = [1, 1]} : vector<2x128xf32> to vector<2x32xf32>
    %286 = math.tanh %285 : vector<2x32xf32>
    %287 = vector.extract_strided_slice %272 {offsets = [0, 96], sizes = [2, 32], strides = [1, 1]} : vector<2x128xf32> to vector<2x32xf32>
    %288 = arith.negf %287 : vector<2x32xf32>
    %289 = math.exp %288 : vector<2x32xf32>
    %cst_57 = arith.constant 1.000000e+00 : f32
    %290 = vector.broadcast %cst_57 : f32 to vector<2x32xf32>
    %291 = arith.addf %290, %289 : vector<2x32xf32>
    %292 = arith.divf %290, %291 : vector<2x32xf32>
    %293 = arith.mulf %284, %267 : vector<2x32xf32>
    %294 = arith.mulf %278, %286 : vector<2x32xf32>
    %295 = arith.addf %293, %294 : vector<2x32xf32>
    %296 = math.tanh %295 : vector<2x32xf32>
    %297 = arith.mulf %292, %296 : vector<2x32xf32>
    %298 = vector.extract_strided_slice %238 {offsets = [4, 0], sizes = [2, 128], strides = [1, 1]} : vector<16x128xf32> to vector<2x128xf32>
    %cst_58 = arith.constant dense<0.000000e+00> : vector<2x128xf32>
    %299 = tpu.matmul %297, %239, %cst_58 {dimension_numbers = #tpu.dot_dimension_numbers<[1], [0], [0], [1], [0, 0, 1, 1], [], []>} : vector<2x32xf32>, vector<32x128xf32>, vector<2x128xf32> -> vector<2x128xf32>
    %300 = arith.addf %298, %299 : vector<2x128xf32>
    %301 = vector.extract_strided_slice %300 {offsets = [0, 0], sizes = [2, 32], strides = [1, 1]} : vector<2x128xf32> to vector<2x32xf32>
    %302 = arith.negf %301 : vector<2x32xf32>
    %303 = math.exp %302 : vector<2x32xf32>
    %cst_59 = arith.constant 1.000000e+00 : f32
    %304 = vector.broadcast %cst_59 : f32 to vector<2x32xf32>
    %305 = arith.addf %304, %303 : vector<2x32xf32>
    %306 = arith.divf %304, %305 : vector<2x32xf32>
    %307 = vector.extract_strided_slice %300 {offsets = [0, 32], sizes = [2, 32], strides = [1, 1]} : vector<2x128xf32> to vector<2x32xf32>
    %308 = arith.negf %307 : vector<2x32xf32>
    %309 = math.exp %308 : vector<2x32xf32>
    %cst_60 = arith.constant 1.000000e+00 : f32
    %310 = vector.broadcast %cst_60 : f32 to vector<2x32xf32>
    %311 = arith.addf %310, %309 : vector<2x32xf32>
    %312 = arith.divf %310, %311 : vector<2x32xf32>
    %313 = vector.extract_strided_slice %300 {offsets = [0, 64], sizes = [2, 32], strides = [1, 1]} : vector<2x128xf32> to vector<2x32xf32>
    %314 = math.tanh %313 : vector<2x32xf32>
    %315 = vector.extract_strided_slice %300 {offsets = [0, 96], sizes = [2, 32], strides = [1, 1]} : vector<2x128xf32> to vector<2x32xf32>
    %316 = arith.negf %315 : vector<2x32xf32>
    %317 = math.exp %316 : vector<2x32xf32>
    %cst_61 = arith.constant 1.000000e+00 : f32
    %318 = vector.broadcast %cst_61 : f32 to vector<2x32xf32>
    %319 = arith.addf %318, %317 : vector<2x32xf32>
    %320 = arith.divf %318, %319 : vector<2x32xf32>
    %321 = arith.mulf %312, %295 : vector<2x32xf32>
    %322 = arith.mulf %306, %314 : vector<2x32xf32>
    %323 = arith.addf %321, %322 : vector<2x32xf32>
    %324 = math.tanh %323 : vector<2x32xf32>
    %325 = arith.mulf %320, %324 : vector<2x32xf32>
    %326 = vector.extract_strided_slice %238 {offsets = [6, 0], sizes = [2, 128], strides = [1, 1]} : vector<16x128xf32> to vector<2x128xf32>
    %cst_62 = arith.constant dense<0.000000e+00> : vector<2x128xf32>
    %327 = tpu.matmul %325, %239, %cst_62 {dimension_numbers = #tpu.dot_dimension_numbers<[1], [0], [0], [1], [0, 0, 1, 1], [], []>} : vector<2x32xf32>, vector<32x128xf32>, vector<2x128xf32> -> vector<2x128xf32>
    %328 = arith.addf %326, %327 : vector<2x128xf32>
    %329 = vector.extract_strided_slice %328 {offsets = [0, 0], sizes = [2, 32], strides = [1, 1]} : vector<2x128xf32> to vector<2x32xf32>
    %330 = arith.negf %329 : vector<2x32xf32>
    %331 = math.exp %330 : vector<2x32xf32>
    %cst_63 = arith.constant 1.000000e+00 : f32
    %332 = vector.broadcast %cst_63 : f32 to vector<2x32xf32>
    %333 = arith.addf %332, %331 : vector<2x32xf32>
    %334 = arith.divf %332, %333 : vector<2x32xf32>
    %335 = vector.extract_strided_slice %328 {offsets = [0, 32], sizes = [2, 32], strides = [1, 1]} : vector<2x128xf32> to vector<2x32xf32>
    %336 = arith.negf %335 : vector<2x32xf32>
    %337 = math.exp %336 : vector<2x32xf32>
    %cst_64 = arith.constant 1.000000e+00 : f32
    %338 = vector.broadcast %cst_64 : f32 to vector<2x32xf32>
    %339 = arith.addf %338, %337 : vector<2x32xf32>
    %340 = arith.divf %338, %339 : vector<2x32xf32>
    %341 = vector.extract_strided_slice %328 {offsets = [0, 64], sizes = [2, 32], strides = [1, 1]} : vector<2x128xf32> to vector<2x32xf32>
    %342 = math.tanh %341 : vector<2x32xf32>
    %343 = vector.extract_strided_slice %328 {offsets = [0, 96], sizes = [2, 32], strides = [1, 1]} : vector<2x128xf32> to vector<2x32xf32>
    %344 = arith.negf %343 : vector<2x32xf32>
    %345 = math.exp %344 : vector<2x32xf32>
    %cst_65 = arith.constant 1.000000e+00 : f32
    %346 = vector.broadcast %cst_65 : f32 to vector<2x32xf32>
    %347 = arith.addf %346, %345 : vector<2x32xf32>
    %348 = arith.divf %346, %347 : vector<2x32xf32>
    %349 = arith.mulf %340, %323 : vector<2x32xf32>
    %350 = arith.mulf %334, %342 : vector<2x32xf32>
    %351 = arith.addf %349, %350 : vector<2x32xf32>
    %352 = math.tanh %351 : vector<2x32xf32>
    %353 = arith.mulf %348, %352 : vector<2x32xf32>
    %354 = vector.extract_strided_slice %238 {offsets = [8, 0], sizes = [2, 128], strides = [1, 1]} : vector<16x128xf32> to vector<2x128xf32>
    %cst_66 = arith.constant dense<0.000000e+00> : vector<2x128xf32>
    %355 = tpu.matmul %353, %239, %cst_66 {dimension_numbers = #tpu.dot_dimension_numbers<[1], [0], [0], [1], [0, 0, 1, 1], [], []>} : vector<2x32xf32>, vector<32x128xf32>, vector<2x128xf32> -> vector<2x128xf32>
    %356 = arith.addf %354, %355 : vector<2x128xf32>
    %357 = vector.extract_strided_slice %356 {offsets = [0, 0], sizes = [2, 32], strides = [1, 1]} : vector<2x128xf32> to vector<2x32xf32>
    %358 = arith.negf %357 : vector<2x32xf32>
    %359 = math.exp %358 : vector<2x32xf32>
    %cst_67 = arith.constant 1.000000e+00 : f32
    %360 = vector.broadcast %cst_67 : f32 to vector<2x32xf32>
    %361 = arith.addf %360, %359 : vector<2x32xf32>
    %362 = arith.divf %360, %361 : vector<2x32xf32>
    %363 = vector.extract_strided_slice %356 {offsets = [0, 32], sizes = [2, 32], strides = [1, 1]} : vector<2x128xf32> to vector<2x32xf32>
    %364 = arith.negf %363 : vector<2x32xf32>
    %365 = math.exp %364 : vector<2x32xf32>
    %cst_68 = arith.constant 1.000000e+00 : f32
    %366 = vector.broadcast %cst_68 : f32 to vector<2x32xf32>
    %367 = arith.addf %366, %365 : vector<2x32xf32>
    %368 = arith.divf %366, %367 : vector<2x32xf32>
    %369 = vector.extract_strided_slice %356 {offsets = [0, 64], sizes = [2, 32], strides = [1, 1]} : vector<2x128xf32> to vector<2x32xf32>
    %370 = math.tanh %369 : vector<2x32xf32>
    %371 = vector.extract_strided_slice %356 {offsets = [0, 96], sizes = [2, 32], strides = [1, 1]} : vector<2x128xf32> to vector<2x32xf32>
    %372 = arith.negf %371 : vector<2x32xf32>
    %373 = math.exp %372 : vector<2x32xf32>
    %cst_69 = arith.constant 1.000000e+00 : f32
    %374 = vector.broadcast %cst_69 : f32 to vector<2x32xf32>
    %375 = arith.addf %374, %373 : vector<2x32xf32>
    %376 = arith.divf %374, %375 : vector<2x32xf32>
    %377 = arith.mulf %368, %351 : vector<2x32xf32>
    %378 = arith.mulf %362, %370 : vector<2x32xf32>
    %379 = arith.addf %377, %378 : vector<2x32xf32>
    %380 = math.tanh %379 : vector<2x32xf32>
    %381 = arith.mulf %376, %380 : vector<2x32xf32>
    %382 = vector.extract_strided_slice %238 {offsets = [10, 0], sizes = [2, 128], strides = [1, 1]} : vector<16x128xf32> to vector<2x128xf32>
    %cst_70 = arith.constant dense<0.000000e+00> : vector<2x128xf32>
    %383 = tpu.matmul %381, %239, %cst_70 {dimension_numbers = #tpu.dot_dimension_numbers<[1], [0], [0], [1], [0, 0, 1, 1], [], []>} : vector<2x32xf32>, vector<32x128xf32>, vector<2x128xf32> -> vector<2x128xf32>
    %384 = arith.addf %382, %383 : vector<2x128xf32>
    %385 = vector.extract_strided_slice %384 {offsets = [0, 0], sizes = [2, 32], strides = [1, 1]} : vector<2x128xf32> to vector<2x32xf32>
    %386 = arith.negf %385 : vector<2x32xf32>
    %387 = math.exp %386 : vector<2x32xf32>
    %cst_71 = arith.constant 1.000000e+00 : f32
    %388 = vector.broadcast %cst_71 : f32 to vector<2x32xf32>
    %389 = arith.addf %388, %387 : vector<2x32xf32>
    %390 = arith.divf %388, %389 : vector<2x32xf32>
    %391 = vector.extract_strided_slice %384 {offsets = [0, 32], sizes = [2, 32], strides = [1, 1]} : vector<2x128xf32> to vector<2x32xf32>
    %392 = arith.negf %391 : vector<2x32xf32>
    %393 = math.exp %392 : vector<2x32xf32>
    %cst_72 = arith.constant 1.000000e+00 : f32
    %394 = vector.broadcast %cst_72 : f32 to vector<2x32xf32>
    %395 = arith.addf %394, %393 : vector<2x32xf32>
    %396 = arith.divf %394, %395 : vector<2x32xf32>
    %397 = vector.extract_strided_slice %384 {offsets = [0, 64], sizes = [2, 32], strides = [1, 1]} : vector<2x128xf32> to vector<2x32xf32>
    %398 = math.tanh %397 : vector<2x32xf32>
    %399 = vector.extract_strided_slice %384 {offsets = [0, 96], sizes = [2, 32], strides = [1, 1]} : vector<2x128xf32> to vector<2x32xf32>
    %400 = arith.negf %399 : vector<2x32xf32>
    %401 = math.exp %400 : vector<2x32xf32>
    %cst_73 = arith.constant 1.000000e+00 : f32
    %402 = vector.broadcast %cst_73 : f32 to vector<2x32xf32>
    %403 = arith.addf %402, %401 : vector<2x32xf32>
    %404 = arith.divf %402, %403 : vector<2x32xf32>
    %405 = arith.mulf %396, %379 : vector<2x32xf32>
    %406 = arith.mulf %390, %398 : vector<2x32xf32>
    %407 = arith.addf %405, %406 : vector<2x32xf32>
    %408 = math.tanh %407 : vector<2x32xf32>
    %409 = arith.mulf %404, %408 : vector<2x32xf32>
    %410 = vector.extract_strided_slice %238 {offsets = [12, 0], sizes = [2, 128], strides = [1, 1]} : vector<16x128xf32> to vector<2x128xf32>
    %cst_74 = arith.constant dense<0.000000e+00> : vector<2x128xf32>
    %411 = tpu.matmul %409, %239, %cst_74 {dimension_numbers = #tpu.dot_dimension_numbers<[1], [0], [0], [1], [0, 0, 1, 1], [], []>} : vector<2x32xf32>, vector<32x128xf32>, vector<2x128xf32> -> vector<2x128xf32>
    %412 = arith.addf %410, %411 : vector<2x128xf32>
    %413 = vector.extract_strided_slice %412 {offsets = [0, 0], sizes = [2, 32], strides = [1, 1]} : vector<2x128xf32> to vector<2x32xf32>
    %414 = arith.negf %413 : vector<2x32xf32>
    %415 = math.exp %414 : vector<2x32xf32>
    %cst_75 = arith.constant 1.000000e+00 : f32
    %416 = vector.broadcast %cst_75 : f32 to vector<2x32xf32>
    %417 = arith.addf %416, %415 : vector<2x32xf32>
    %418 = arith.divf %416, %417 : vector<2x32xf32>
    %419 = vector.extract_strided_slice %412 {offsets = [0, 32], sizes = [2, 32], strides = [1, 1]} : vector<2x128xf32> to vector<2x32xf32>
    %420 = arith.negf %419 : vector<2x32xf32>
    %421 = math.exp %420 : vector<2x32xf32>
    %cst_76 = arith.constant 1.000000e+00 : f32
    %422 = vector.broadcast %cst_76 : f32 to vector<2x32xf32>
    %423 = arith.addf %422, %421 : vector<2x32xf32>
    %424 = arith.divf %422, %423 : vector<2x32xf32>
    %425 = vector.extract_strided_slice %412 {offsets = [0, 64], sizes = [2, 32], strides = [1, 1]} : vector<2x128xf32> to vector<2x32xf32>
    %426 = math.tanh %425 : vector<2x32xf32>
    %427 = vector.extract_strided_slice %412 {offsets = [0, 96], sizes = [2, 32], strides = [1, 1]} : vector<2x128xf32> to vector<2x32xf32>
    %428 = arith.negf %427 : vector<2x32xf32>
    %429 = math.exp %428 : vector<2x32xf32>
    %cst_77 = arith.constant 1.000000e+00 : f32
    %430 = vector.broadcast %cst_77 : f32 to vector<2x32xf32>
    %431 = arith.addf %430, %429 : vector<2x32xf32>
    %432 = arith.divf %430, %431 : vector<2x32xf32>
    %433 = arith.mulf %424, %407 : vector<2x32xf32>
    %434 = arith.mulf %418, %426 : vector<2x32xf32>
    %435 = arith.addf %433, %434 : vector<2x32xf32>
    %436 = math.tanh %435 : vector<2x32xf32>
    %437 = arith.mulf %432, %436 : vector<2x32xf32>
    %438 = vector.extract_strided_slice %238 {offsets = [14, 0], sizes = [2, 128], strides = [1, 1]} : vector<16x128xf32> to vector<2x128xf32>
    %cst_78 = arith.constant dense<0.000000e+00> : vector<2x128xf32>
    %439 = tpu.matmul %437, %239, %cst_78 {dimension_numbers = #tpu.dot_dimension_numbers<[1], [0], [0], [1], [0, 0, 1, 1], [], []>} : vector<2x32xf32>, vector<32x128xf32>, vector<2x128xf32> -> vector<2x128xf32>
    %440 = arith.addf %438, %439 : vector<2x128xf32>
    %441 = vector.extract_strided_slice %440 {offsets = [0, 0], sizes = [2, 32], strides = [1, 1]} : vector<2x128xf32> to vector<2x32xf32>
    %442 = arith.negf %441 : vector<2x32xf32>
    %443 = math.exp %442 : vector<2x32xf32>
    %cst_79 = arith.constant 1.000000e+00 : f32
    %444 = vector.broadcast %cst_79 : f32 to vector<2x32xf32>
    %445 = arith.addf %444, %443 : vector<2x32xf32>
    %446 = arith.divf %444, %445 : vector<2x32xf32>
    %447 = vector.extract_strided_slice %440 {offsets = [0, 32], sizes = [2, 32], strides = [1, 1]} : vector<2x128xf32> to vector<2x32xf32>
    %448 = arith.negf %447 : vector<2x32xf32>
    %449 = math.exp %448 : vector<2x32xf32>
    %cst_80 = arith.constant 1.000000e+00 : f32
    %450 = vector.broadcast %cst_80 : f32 to vector<2x32xf32>
    %451 = arith.addf %450, %449 : vector<2x32xf32>
    %452 = arith.divf %450, %451 : vector<2x32xf32>
    %453 = vector.extract_strided_slice %440 {offsets = [0, 64], sizes = [2, 32], strides = [1, 1]} : vector<2x128xf32> to vector<2x32xf32>
    %454 = math.tanh %453 : vector<2x32xf32>
    %455 = vector.extract_strided_slice %440 {offsets = [0, 96], sizes = [2, 32], strides = [1, 1]} : vector<2x128xf32> to vector<2x32xf32>
    %456 = arith.negf %455 : vector<2x32xf32>
    %457 = math.exp %456 : vector<2x32xf32>
    %cst_81 = arith.constant 1.000000e+00 : f32
    %458 = vector.broadcast %cst_81 : f32 to vector<2x32xf32>
    %459 = arith.addf %458, %457 : vector<2x32xf32>
    %460 = arith.divf %458, %459 : vector<2x32xf32>
    %461 = arith.mulf %452, %435 : vector<2x32xf32>
    %462 = arith.mulf %446, %454 : vector<2x32xf32>
    %463 = arith.addf %461, %462 : vector<2x32xf32>
    %464 = math.tanh %463 : vector<2x32xf32>
    %465 = arith.mulf %460, %464 : vector<2x32xf32>
    %466 = tpu.concatenate %269, %297, %325, %353, %381, %409, %437, %465 in 1 : vector<2x32xf32>, vector<2x32xf32>, vector<2x32xf32>, vector<2x32xf32>, vector<2x32xf32>, vector<2x32xf32>, vector<2x32xf32>, vector<2x32xf32> -> vector<2x256xf32>
    %c0_82 = arith.constant 0 : index
    %c0_83 = arith.constant 0 : index
    %467 = vector.load %arg7[%c0_82, %c0_83] : memref<256x32xf32, #tpu.memory_space<vmem>>, vector<256x32xf32>
    %cst_84 = arith.constant dense<0.000000e+00> : vector<2x32xf32>
    %468 = tpu.matmul %466, %467, %cst_84 {dimension_numbers = #tpu.dot_dimension_numbers<[1], [0], [0], [1], [0, 0, 1, 1], [], []>} : vector<2x256xf32>, vector<256x32xf32>, vector<2x32xf32> -> vector<2x32xf32>
    %c0_85 = arith.constant 0 : index
    %c0_86 = arith.constant 0 : index
    %469 = vector.load %arg8[%c0_85, %c0_86] : memref<1x32xf32, #tpu.memory_space<vmem>>, vector<1x32xf32>
    %470 = vector.broadcast %469 : vector<1x32xf32> to vector<2x32xf32>
    %471 = arith.addf %468, %470 : vector<2x32xf32>
    %cst_87 = arith.constant 0.000000e+00 : f32
    %472 = vector.broadcast %cst_87 : f32 to vector<2x32xf32>
    %473 = arith.maximumf %471, %472 : vector<2x32xf32>
    %c0_88 = arith.constant 0 : index
    %c0_89 = arith.constant 0 : index
    %474 = vector.load %arg9[%c0_88, %c0_89] : memref<32x64xf32, #tpu.memory_space<vmem>>, vector<32x64xf32>
    %cst_90 = arith.constant dense<0.000000e+00> : vector<2x64xf32>
    %475 = tpu.matmul %473, %474, %cst_90 {dimension_numbers = #tpu.dot_dimension_numbers<[1], [0], [0], [1], [0, 0, 1, 1], [], []>} : vector<2x32xf32>, vector<32x64xf32>, vector<2x64xf32> -> vector<2x64xf32>
    %c0_91 = arith.constant 0 : index
    %c0_92 = arith.constant 0 : index
    %476 = vector.load %arg10[%c0_91, %c0_92] : memref<1x64xf32, #tpu.memory_space<vmem>>, vector<1x64xf32>
    %477 = vector.broadcast %476 : vector<1x64xf32> to vector<2x64xf32>
    %478 = arith.addf %475, %477 : vector<2x64xf32>
    %cst_93 = arith.constant 0.000000e+00 : f32
    %479 = vector.broadcast %cst_93 : f32 to vector<2x64xf32>
    %480 = arith.cmpf oge, %478, %479 : vector<2x64xf32>
    %cst_94 = arith.constant 0.00999999977 : f32
    %481 = vector.broadcast %cst_94 : f32 to vector<2x64xf32>
    %482 = arith.mulf %481, %478 : vector<2x64xf32>
    %483 = arith.select %480, %478, %482 : vector<2x64xi1>, vector<2x64xf32>
    %c0_95 = arith.constant 0 : index
    %c0_96 = arith.constant 0 : index
    %484 = vector.load %arg11[%c0_95, %c0_96] : memref<2x64xf32, #tpu.memory_space<vmem>>, vector<2x64xf32>
    tpu.vector_store %arg11[%c0_95, %c0_96], %483 {strides = array<i32>} : memref<2x64xf32, #tpu.memory_space<vmem>>, vector<2x64xf32>,
    return
  }
}

</mosaic_0001>

<bundles_post_ra>
// kernel: tpu_custom_call.1
= control target key start
LH: loop header
LB: loop body
LE: loop exit
PB: predicated region body
PF: predicated region fallthrough
CT: control target
= control target key end

     0   :  { %vm50_vm0 = vcmask 130048   ;;  %v2855_v3 = vmov 0.0|0.0   ;;  %vm2856_vm1 = vmmov 0   ;;  %v2857_v10 = vmov 0.0   ;;  %s3384_s0 = inlined_call_operand.vmem [shape: f32[16,16], index: 0, kind: input, shape index: {}]   ;;  %s3385_s1 = inlined_call_operand.vmem [shape: f32[16,128], index: 1, kind: input, shape index: {}]   ;;  %s3386_s2 = inlined_call_operand.vmem [shape: f32[32,128], index: 2, kind: input, shape index: {}]   ;;  %s3387_s3 = inlined_call_operand.vmem [shape: f32[1,128], index: 3, kind: input, shape index: {}]   ;;  %s3388_s4 = inlined_call_operand.vmem [shape: f32[32,128], index: 4, kind: input, shape index: {}]   ;;  %s3389_s5 = inlined_call_operand.vmem [shape: f32[32,128], index: 5, kind: input, shape index: {}]   ;;  %s3390_s6 = inlined_call_operand.vmem [shape: f32[1,128], index: 6, kind: input, shape index: {}]   ;;  %s3391_s7 = inlined_call_operand.vmem [shape: f32[256,32], index: 7, kind: input, shape index: {}]   ;;  %s3392_s8 = inlined_call_operand.vmem [shape: f32[1,32], index: 8, kind: input, shape index: {}]   ;;  %s3393_s9 = inlined_call_operand.vmem [shape: f32[32,64], index: 9, kind: input, shape index: {}]   ;;  %s3394_s10 = inlined_call_operand.vmem [shape: f32[1,64], index: 10, kind: input, shape index: {}]   ;;  %s3395_s11 = inlined_call_operand.hbm [shape: f32[2,64], index: 11, kind: output, shape index: {}]  }
   0x1   :  { %v41_v0 = vld [vmem:[%s3385_s1] sm:$0xff]  ;;  %v42_v1 = vld [vmem:[%s3385_s1 + $0x8] sm:$0xff]  ;;  %2544 = vmatprep.subr.bf16.mxu1 %v2855_v3  ;;  %v134_v8 = vld [vmem:[%s3386_s2 + $0x10] sm:$0xff]  ;;  %2350 = vmatprep.mubr.msk.f32.mxu1 %vm2856_vm1, %v2857_v10 }
   0x2   :  { %v132_v2 = vld [vmem:[%s3386_s2] sm:$0xff]  ;;  %v2540_v4 = vpack.c.bf16 %v42_v1, %v41_v0  ;;  %v133_v5 = vld [vmem:[%s3386_s2 + $0x8] sm:$0xff]  ;;  %v135_v9 = vld [vmem:[%s3386_s2 + $0x18] sm:$0xff] }
   0x3   :  { %v39_v6 = vld [vmem:[%s3384_s0] sm:$0xff]  ;;  %v2938_v7 = vpack.c.bf16 %v133_v5, %v132_v2 }
   0x4   :  { %2339 = vmatprep.mubr.msk.f32.mxu0 %vm50_vm0, %v39_v6 }
   0x5   :  { %16 = vsyncpa [#allocation3], 0  ;;  %2541 = vmatprep.subr.bf16.mxu0 %v2540_v4  ;;  %2546 = vmatpush3.bf16.msra.mxu1 %v2938_v7  ;;  %v40_v11 = vld [vmem:[%s3384_s0 + $0x8] sm:$0xff]  ;;  %v2953_v12 = vpack.c.bf16 %v135_v9, %v134_v8  ;;  %v2166_v13 = vld [vmem:[%s3387_s3] ss:$0 sm:$0xff]  ;;  %s2858_s13 = smov 64  }
   0x6   :  { %2543 = vmatpush3.bf16.msra.mxu0 %v2540_v4  ;;  %2547 = vmatprep.subr.bf16.mxu1 %v2855_v3  ;;  %s2859_s3 = smov 32   ;;  %vm136_vm2 = vcmask 261120   ;;  %vm979_vm3 = vcmask 1041408   ;;  %vm981_vm4 = vcmask 1043456   ;;  %vm983_vm5 = vcmask 1045504   ;;  %s2860_s21 = smov 96  }
   0x7   :  { %2562 = vmatprep.subr.bf16.mxu0 %v2855_v3  ;;  %vm1946_vm6 = vcmask 523264   ;;  %vm1948_vm7 = vcmask 785408   ;;  %vm2150_vm9 = vcmask 517120  }
   0x9   :  { %2340 = vmatmul.mubr.msk.f32.vlgmr.msra.gmra.mrb[0].mxu0 %vm50_vm0, %v40_v11  ;;  %2549 = vmatpush3.bf16.msra.mxu1 %v2953_v12 }
   0xa   :  { %2564 = vmatpush3.bf16.msra.mxu0 %v2938_v7  ;;  %2550 = vmatprep.subr.bf16.mxu1 %v2855_v3 }
   0xb   :  { %2565 = vmatprep.subr.bf16.mxu0 %v2855_v3  ;;  %2383 = vmatprep.mubr.msk.f32.mxu0 %vm2856_vm1, %v2857_v10 }
   0xc   :  { %2351 = vmatmul.mubr.f32.vlgmr.msra.gmra.mrb[0].mxu1 %v2857_v10 }
   0xd   :  { %2552 = vmatpush3.bf16.msra.mxu1 %v2938_v7  ;;  %2361 = vmatprep.mubr.msk.f32.mxu1 %vm2856_vm1, %v2857_v10 }
   0xe   :  { %2553 = vmatprep.subr.bf16.mxu1 %v2855_v3  ;;  %2567 = vmatpush3.bf16.msra.mxu0 %v2953_v12 }
   0xf   :  { %2574 = vmatprep.subr.bf16.mxu0 %v2855_v3 }
  0x11   :  { %2555 = vmatpush3.bf16.msra.mxu1 %v2953_v12 }
  0x12   :  { %2556 = vmatprep.subr.bf16.mxu1 %v2855_v3 }
  0xdc   :  { %v2341_v14 = vpop.f32.mrb[0].mxu0 }
  0xdd   :  { %v2976_v15 = vadd.f32 %v2341_v14, %v2166_v13  ;;  %v123_v16 = vpop.f32.mrb[1].mxu0 }
  0xde   :  { %v2978_v17 = vadd.f32 %v2166_v13, %v123_v16 }
  0xdf   :  { %v206_v18 = vpop.f32.mrb[0].mxu1 }
  0xe0   :  { %v210_v19 = vadd.f32 %v206_v18, %v2978_v17  ;;  %v2352_v20 = vpop.f32.mrb[1].mxu1 }
  0xe2   :  { %2703 = vtanh.f32 %v210_v19  ;;  %v2169_v22 = vmul.f32 -1.442695, %v210_v19 }
  0xe4   :  { %2705 = vpow2.f32 %v2169_v22 }
  0xec   :  { %v2704_v21 = vpop.eup %2703 }
  0xed   :  { %220 = vrot.lane.b32.xlu0 %v2704_v21, %s2858_s13 }
  0xee   :  { %v2706_v23 = vpop.eup %2705 }
  0xef   :  { %v214_v24 = vadd.f32 1.0, %v2706_v23 }
  0xf1   :  { %2707 = vrcp.f32 %v214_v24 }
  0xfb   :  { %v2708_v25 = vpop.eup %2707 }
  0xfc   :  { %v218_v28 = vmul.f32 0.0, %v2708_v25 }
 0x15f   :  { %v221_v26 = vpop.permute.xlu0 %220 }
 0x160   :  { %v223_v27 = vmul.f32 %v2708_v25, %v221_v26 }
 0x162   :  { %225 = vrot.lane.b32.xlu0 %v223_v27, %s2859_s3 }
 0x1d4   :  { %v226_v29 = vpop.permute.xlu0 %225 }
 0x1d5   :  { %v228_v30 = vadd.f32 %v226_v29, %v218_v28 }
 0x1d7   :  { %2709 = vtanh.f32 %v228_v30  ;;  %v322_v46 = vrot.slane %v228_v30, 6 }
 0x1e1   :  { %v2710_v31 = vpop.eup %2709 }
 0x1e2   :  { %231 = vrot.lane.b32.xlu1 %v2710_v31, %s2858_s13 }
 0x254   :  { %v232_v32 = vpop.permute.xlu1 %231 }
 0x255   :  { %v2984_v33 = vmul.f32 %v2708_v25, %v232_v32 }
 0x257   :  { %236 = vrot.lane.b32.xlu1 %v2984_v33, %s2859_s3 }
 0x2c9   :  { %v237_v34 = vpop.permute.xlu1 %236 }
 0x2ca   :  { %2362 = vmatmul.mubr.msk.f32.vlgmr.msra.gmra.mrb[2].mxu1 %vm136_vm2, %v237_v34 }
 0x2cb   :  { %2558 = vmatpush3.bf16.msra.mxu1 %v2938_v7  ;;  %2372 = vmatprep.mubr.msk.f32.mxu1 %vm2856_vm1, %v2857_v10 }
 0x2cc   :  { %2559 = vmatprep.subr.bf16.mxu1 %v2855_v3 }
 0x2cf   :  { %2561 = vmatpush3.bf16.msra.mxu1 %v2953_v12 }
 0x2d0   :  { %2568 = vmatprep.subr.bf16.mxu1 %v2855_v3 }
 0x39d   :  { %v306_v35 = vpop.f32.mrb[2].mxu1 }
 0x39e   :  { %v311_v36 = vrot.slane %v306_v35, 6  ;;  %v2363_v37 = vpop.f32.mrb[3].mxu1 }
 0x3a0   :  { %v313_v38 = vadd.f32 %v311_v36, %v2978_v17 }
 0x3a2   :  { %2711 = vtanh.f32 %v313_v38  ;;  %v2171_v40 = vmul.f32 -1.442695, %v313_v38 }
 0x3a4   :  { %2713 = vpow2.f32 %v2171_v40 }
 0x3ac   :  { %v2712_v39 = vpop.eup %2711 }
 0x3ad   :  { %326 = vrot.lane.b32.xlu0 %v2712_v39, %s2858_s13 }
 0x3ae   :  { %v2714_v41 = vpop.eup %2713 }
 0x3af   :  { %v317_v42 = vadd.f32 1.0, %v2714_v41 }
 0x3b1   :  { %2715 = vrcp.f32 %v317_v42 }
 0x3bb   :  { %v2716_v43 = vpop.eup %2715 }
 0x3bc   :  { %v324_v47 = vmul.f32 %v2716_v43, %v322_v46 }
 0x41f   :  { %v327_v44 = vpop.permute.xlu0 %326 }
 0x420   :  { %v329_v45 = vmul.f32 %v2716_v43, %v327_v44 }
 0x422   :  { %331 = vrot.lane.b32.xlu1 %v329_v45, %s2859_s3 }
 0x494   :  { %v332_v48 = vpop.permute.xlu1 %331 }
 0x495   :  { %v334_v49 = vadd.f32 %v332_v48, %v324_v47 }
 0x497   :  { %2717 = vtanh.f32 %v334_v49  ;;  %v429_v2 = vrot.slane %v334_v49, 6 }
 0x4a1   :  { %v2718_v50 = vpop.eup %2717 }
 0x4a2   :  { %337 = vrot.lane.b32.xlu0 %v2718_v50, %s2858_s13 }
 0x514   :  { %v338_v51 = vpop.permute.xlu0 %337 }
 0x515   :  { %v340_v52 = vmul.f32 %v2716_v43, %v338_v51 }
 0x517   :  { %v342_v53 = vrot.slane %v340_v52, 2  ;;  %v980_v13 = vsel %vm979_vm3, %v2984_v33, %v340_v52 }
 0x519   :  { %343 = vrot.lane.b32.xlu1 %v342_v53, %s2859_s3 }
 0x58b   :  { %v344_v54 = vpop.permute.xlu1 %343 }
 0x58c   :  { %2373 = vmatmul.mubr.msk.f32.vlgmr.msra.gmra.mrb[4].mxu1 %vm136_vm2, %v344_v54 }
 0x58d   :  { %2570 = vmatpush3.bf16.msra.mxu1 %v2938_v7  ;;  %2394 = vmatprep.mubr.msk.f32.mxu1 %vm2856_vm1, %v2857_v10 }
 0x58e   :  { %2571 = vmatprep.subr.bf16.mxu1 %v2855_v3 }
 0x591   :  { %2573 = vmatpush3.bf16.msra.mxu1 %v2953_v12 }
 0x592   :  { %2580 = vmatprep.subr.bf16.mxu1 %v2855_v3 }
 0x65f   :  { %v413_v55 = vpop.f32.mrb[4].mxu1 }
 0x660   :  { %v418_v56 = vrot.slane %v413_v55, 4  ;;  %v2374_v57 = vpop.f32.mrb[5].mxu1 }
 0x662   :  { %v420_v58 = vadd.f32 %v418_v56, %v2978_v17 }
 0x664   :  { %2719 = vtanh.f32 %v420_v58  ;;  %v2173_v60 = vmul.f32 -1.442695, %v420_v58 }
 0x666   :  { %2721 = vpow2.f32 %v2173_v60 }
 0x66e   :  { %v2720_v59 = vpop.eup %2719 }
 0x66f   :  { %433 = vrot.lane.b32.xlu0 %v2720_v59, %s2858_s13 }
 0x670   :  { %v2722_v61 = vpop.eup %2721 }
 0x671   :  { %v424_v62 = vadd.f32 1.0, %v2722_v61 }
 0x673   :  { %2723 = vrcp.f32 %v424_v62 }
 0x67d   :  { %v2724_v63 = vpop.eup %2723 }
 0x67e   :  { %v431_v4 = vmul.f32 %v2724_v63, %v429_v2 }
 0x6e1   :  { %v434_v0 = vpop.permute.xlu0 %433 }
 0x6e2   :  { %v436_v1 = vmul.f32 %v2724_v63, %v434_v0 }
 0x6e4   :  { %438 = vrot.lane.b32.xlu1 %v436_v1, %s2859_s3 }
 0x756   :  { %v439_v5 = vpop.permute.xlu1 %438 }
 0x757   :  { %v441_v6 = vadd.f32 %v439_v5, %v431_v4 }
 0x759   :  { %2725 = vtanh.f32 %v441_v6  ;;  %v536_v30 = vrot.slane %v441_v6, 6 }
 0x763   :  { %v2726_v8 = vpop.eup %2725 }
 0x764   :  { %444 = vrot.lane.b32.xlu0 %v2726_v8, %s2858_s13 }
 0x7d6   :  { %v445_v9 = vpop.permute.xlu0 %444 }
 0x7d7   :  { %v447_v11 = vmul.f32 %v2724_v63, %v445_v9 }
 0x7d9   :  { %v449_v14 = vrot.slane %v447_v11, 4  ;;  %v982_v16 = vsel %vm981_vm4, %v980_v13, %v447_v11 }
 0x7db   :  { %450 = vrot.lane.b32.xlu1 %v449_v14, %s2859_s3 }
 0x84d   :  { %v451_v18 = vpop.permute.xlu1 %450 }
 0x84e   :  { %2384 = vmatmul.mubr.msk.f32.vlgmr.msra.gmra.mrb[2].mxu0 %vm136_vm2, %v451_v18 }
 0x84f   :  { %2576 = vmatpush3.bf16.msra.mxu0 %v2938_v7  ;;  %2405 = vmatprep.mubr.msk.f32.mxu0 %vm2856_vm1, %v2857_v10 }
 0x850   :  { %2577 = vmatprep.subr.bf16.mxu0 %v2855_v3 }
 0x853   :  { %2579 = vmatpush3.bf16.msra.mxu0 %v2953_v12 }
 0x854   :  { %2586 = vmatprep.subr.bf16.mxu0 %v2855_v3 }
 0x921   :  { %v520_v19 = vpop.f32.mrb[2].mxu0 }
 0x922   :  { %v525_v20 = vrot.slane %v520_v19, 2  ;;  %v2385_v21 = vpop.f32.mrb[3].mxu0 }
 0x924   :  { %v527_v22 = vadd.f32 %v525_v20, %v2978_v17 }
 0x926   :  { %2727 = vtanh.f32 %v527_v22  ;;  %v2175_v24 = vmul.f32 -1.442695, %v527_v22 }
 0x928   :  { %2729 = vpow2.f32 %v2175_v24 }
 0x930   :  { %v2728_v23 = vpop.eup %2727 }
 0x931   :  { %540 = vrot.lane.b32.xlu0 %v2728_v23, %s2858_s13 }
 0x932   :  { %v2730_v25 = vpop.eup %2729 }
 0x933   :  { %v531_v26 = vadd.f32 1.0, %v2730_v25 }
 0x935   :  { %2731 = vrcp.f32 %v531_v26 }
 0x93f   :  { %v2732_v27 = vpop.eup %2731 }
 0x940   :  { %v538_v31 = vmul.f32 %v2732_v27, %v536_v30 }
 0x9a3   :  { %v541_v28 = vpop.permute.xlu0 %540 }
 0x9a4   :  { %v543_v29 = vmul.f32 %v2732_v27, %v541_v28 }
 0x9a6   :  { %545 = vrot.lane.b32.xlu1 %v543_v29, %s2859_s3 }
 0xa18   :  { %v546_v32 = vpop.permute.xlu1 %545 }
 0xa19   :  { %v548_v33 = vadd.f32 %v546_v32, %v538_v31 }
 0xa1b   :  { %2733 = vtanh.f32 %v548_v33  ;;  %v640_v49 = vrot.slane %v548_v33, 6 }
 0xa25   :  { %v2734_v17 = vpop.eup %2733 }
 0xa26   :  { %551 = vrot.lane.b32.xlu0 %v2734_v17, %s2858_s13 }
 0xa98   :  { %v552_v34 = vpop.permute.xlu0 %551 }
 0xa99   :  { %v554_v35 = vmul.f32 %v2732_v27, %v552_v34 }
 0xa9b   :  { %v556_v36 = vrot.slane %v554_v35, 6  ;;  %v3027_v37 = vsel %vm983_vm5, %v982_v16, %v554_v35 }
 0xa9d   :  { %557 = vrot.lane.b32.xlu1 %v556_v36, %s2859_s3 }
 0xb0f   :  { %v558_v38 = vpop.permute.xlu1 %557 }
 0xb10   :  { %2395 = vmatmul.mubr.msk.f32.vlgmr.msra.gmra.mrb[6].mxu1 %vm136_vm2, %v558_v38 }
 0xb11   :  { %2582 = vmatpush3.bf16.msra.mxu1 %v2938_v7  ;;  %2416 = vmatprep.mubr.msk.f32.mxu1 %vm2856_vm1, %v2857_v10 }
 0xb12   :  { %2583 = vmatprep.subr.bf16.mxu1 %v2855_v3 }
 0xb15   :  { %2585 = vmatpush3.bf16.msra.mxu1 %v2953_v12 }
 0xbe3   :  { %v627_v39 = vpop.f32.mrb[6].mxu1 }
 0xbe4   :  { %v631_v40 = vadd.f32 %v627_v39, %v2976_v15  ;;  %v2396_v41 = vpop.f32.mrb[7].mxu1 }
 0xbe6   :  { %2735 = vtanh.f32 %v631_v40  ;;  %v2177_v43 = vmul.f32 -1.442695, %v631_v40 }
 0xbe8   :  { %2737 = vpow2.f32 %v2177_v43 }
 0xbf0   :  { %v2736_v42 = vpop.eup %2735 }
 0xbf1   :  { %644 = vrot.lane.b32.xlu0 %v2736_v42, %s2858_s13 }
 0xbf2   :  { %v2738_v44 = vpop.eup %2737 }
 0xbf3   :  { %v635_v45 = vadd.f32 1.0, %v2738_v44 }
 0xbf5   :  { %2739 = vrcp.f32 %v635_v45 }
 0xbff   :  { %v2740_v46 = vpop.eup %2739 }
 0xc00   :  { %v642_v50 = vmul.f32 %v2740_v46, %v640_v49 }
 0xc63   :  { %v645_v47 = vpop.permute.xlu0 %644 }
 0xc64   :  { %v647_v48 = vmul.f32 %v2740_v46, %v645_v47 }
 0xc66   :  { %649 = vrot.lane.b32.xlu1 %v647_v48, %s2859_s3 }
 0xcd8   :  { %v650_v51 = vpop.permute.xlu1 %649 }
 0xcd9   :  { %v652_v52 = vadd.f32 %v650_v51, %v642_v50 }
 0xcdb   :  { %2741 = vtanh.f32 %v652_v52 }
 0xce5   :  { %v2742_v53 = vpop.eup %2741 }
 0xce6   :  { %655 = vrot.lane.b32.xlu0 %v2742_v53, %s2858_s13 }
 0xd58   :  { %v656_v54 = vpop.permute.xlu0 %655 }
 0xd59   :  { %v3040_v55 = vmul.f32 %v2740_v46, %v656_v54  ;;  %v988_v54 = vld [vmem:[%s3388_s4] sm:$0xff] }
 0xd5b   :  { %660 = vrot.lane.b32.xlu1 %v3040_v55, %s2859_s3 }
 0xdcd   :  { %v661_v56 = vpop.permute.xlu1 %660 }
 0xdce   :  { %2406 = vmatmul.mubr.msk.f32.vlgmr.msra.gmra.mrb[4].mxu0 %vm136_vm2, %v661_v56  ;;  %v1084_v56 = vld [vmem:[%s3389_s5] sm:$0xff] }
 0xdcf   :  { %2588 = vmatpush3.bf16.msra.mxu0 %v2938_v7  ;;  %2427 = vmatprep.mubr.msk.f32.mxu0 %vm2856_vm1, %v2857_v10 }
 0xdd0   :  { %2589 = vmatprep.subr.bf16.mxu0 %v2855_v3 }
 0xdd3   :  { %2591 = vmatpush3.bf16.msra.mxu0 %v2953_v12  ;;  %v746_v12 = vrot.slane %v652_v52, 6 }
 0xdd4   :  { %2600 = vmatprep.subr.bf16.mxu0 %v2855_v3 }
 0xea1   :  { %v730_v57 = vpop.f32.mrb[4].mxu0 }
 0xea2   :  { %v735_v58 = vrot.slane %v730_v57, 6  ;;  %v2407_v59 = vpop.f32.mrb[5].mxu0  ;;  %v1085_v57 = vld [vmem:[%s3389_s5 + $0x8] sm:$0xff] }
 0xea3   :  { %v991_v59 = vld [vmem:[%s3388_s4 + $0x18] sm:$0xff] }
 0xea4   :  { %v737_v60 = vadd.f32 %v735_v58, %v2976_v15  ;;  %v990_v58 = vld [vmem:[%s3388_s4 + $0x10] sm:$0xff] }
 0xea6   :  { %2743 = vtanh.f32 %v737_v60  ;;  %v2179_v62 = vmul.f32 -1.442695, %v737_v60  ;;  %v3092_v60 = vpack.c.bf16 %v1085_v57, %v1084_v56 }
 0xea8   :  { %2745 = vpow2.f32 %v2179_v62  ;;  %v1086_v62 = vld [vmem:[%s3389_s5 + $0x10] sm:$0xff] }
 0xeb0   :  { %v2744_v61 = vpop.eup %2743 }
 0xeb1   :  { %750 = vrot.lane.b32.xlu0 %v2744_v61, %s2858_s13  ;;  %v2596_v61 = vpack.c.bf16 %v991_v59, %v990_v58 }
 0xeb2   :  { %v2746_v7 = vpop.eup %2745 }
 0xeb3   :  { %v741_v63 = vadd.f32 1.0, %v2746_v7  ;;  %v1087_v7 = vld [vmem:[%s3389_s5 + $0x18] sm:$0xff] }
 0xeb5   :  { %2747 = vrcp.f32 %v741_v63  ;;  %v3101_v63 = vpack.c.bf16 %v1087_v7, %v1086_v62 }
 0xebf   :  { %v2748_v0 = vpop.eup %2747 }
 0xec0   :  { %v748_v4 = vmul.f32 %v2748_v0, %v746_v12 }
 0xf23   :  { %v751_v1 = vpop.permute.xlu0 %750 }
 0xf24   :  { %v753_v2 = vmul.f32 %v2748_v0, %v751_v1 }
 0xf26   :  { %755 = vrot.lane.b32.xlu1 %v753_v2, %s2859_s3 }
 0xf98   :  { %v756_v5 = vpop.permute.xlu1 %755 }
 0xf99   :  { %v758_v6 = vadd.f32 %v756_v5, %v748_v4 }
 0xf9b   :  { %2749 = vtanh.f32 %v758_v6  ;;  %v853_v28 = vrot.slane %v758_v6, 6 }
 0xfa5   :  { %v2750_v8 = vpop.eup %2749 }
 0xfa6   :  { %761 = vrot.lane.b32.xlu0 %v2750_v8, %s2858_s13  ;;  %v2184_v8 = vld [vmem:[%s3390_s6] ss:$0 sm:$0xff] }
0x1018   :  { %v762_v9 = vpop.permute.xlu0 %761 }
0x1019   :  { %v764_v11 = vmul.f32 %v2748_v0, %v762_v9 }
0x101b   :  { %v766_v13 = vrot.slane %v764_v11, 2  ;;  %v985_v34 = vsel %vm979_vm3, %v3040_v55, %v764_v11  ;;  %v989_v55 = vld [vmem:[%s3388_s4 + $0x8] sm:$0xff] }
0x101d   :  { %767 = vrot.lane.b32.xlu1 %v766_v13, %s2859_s3 }
0x108f   :  { %v768_v14 = vpop.permute.xlu1 %767 }
0x1090   :  { %2417 = vmatmul.mubr.msk.f32.vlgmr.msra.gmra.mrb[8].mxu1 %vm136_vm2, %v768_v14 }
0x1163   :  { %v837_v16 = vpop.f32.mrb[8].mxu1 }
0x1164   :  { %v842_v18 = vrot.slane %v837_v16, 4  ;;  %v2418_v19 = vpop.f32.mrb[9].mxu1 }
0x1166   :  { %v844_v20 = vadd.f32 %v842_v18, %v2976_v15 }
0x1168   :  { %2751 = vtanh.f32 %v844_v20  ;;  %v2181_v22 = vmul.f32 -1.442695, %v844_v20 }
0x116a   :  { %2753 = vpow2.f32 %v2181_v22 }
0x1172   :  { %v2752_v21 = vpop.eup %2751 }
0x1173   :  { %857 = vrot.lane.b32.xlu0 %v2752_v21, %s2858_s13 }
0x1174   :  { %v2754_v23 = vpop.eup %2753 }
0x1175   :  { %v848_v24 = vadd.f32 1.0, %v2754_v23 }
0x1177   :  { %2755 = vrcp.f32 %v848_v24 }
0x1181   :  { %v2756_v25 = vpop.eup %2755 }
0x1182   :  { %v855_v29 = vmul.f32 %v2756_v25, %v853_v28 }
0x11e5   :  { %v858_v26 = vpop.permute.xlu0 %857 }
0x11e6   :  { %v860_v27 = vmul.f32 %v2756_v25, %v858_v26 }
0x11e8   :  { %862 = vrot.lane.b32.xlu1 %v860_v27, %s2859_s3 }
0x125a   :  { %v863_v30 = vpop.permute.xlu1 %862 }
0x125b   :  { %v865_v31 = vadd.f32 %v863_v30, %v855_v29 }
0x125d   :  { %2757 = vtanh.f32 %v865_v31  ;;  %v960_v50 = vrot.slane %v865_v31, 6 }
0x1267   :  { %v2758_v32 = vpop.eup %2757 }
0x1268   :  { %868 = vrot.lane.b32.xlu0 %v2758_v32, %s2858_s13 }
0x12da   :  { %v869_v33 = vpop.permute.xlu0 %868 }
0x12db   :  { %v871_v17 = vmul.f32 %v2756_v25, %v869_v33 }
0x12dd   :  { %v873_v35 = vrot.slane %v871_v17, 4  ;;  %v986_v36 = vsel %vm981_vm4, %v985_v34, %v871_v17 }
0x12df   :  { %874 = vrot.lane.b32.xlu1 %v873_v35, %s2859_s3 }
0x1351   :  { %v875_v38 = vpop.permute.xlu1 %874 }
0x1352   :  { %2428 = vmatmul.mubr.msk.f32.vlgmr.msra.gmra.mrb[6].mxu0 %vm136_vm2, %v875_v38 }
0x1353   :  { %2449 = vmatprep.mubr.msk.f32.mxu0 %vm2856_vm1, %v2857_v10  ;;  %2602 = vmatpush3.bf16.msra.mxu0 %v3092_v60 }
0x1354   :  { %2603 = vmatprep.subr.bf16.mxu0 %v2855_v3 }
0x1357   :  { %2605 = vmatpush3.bf16.msra.mxu0 %v3101_v63 }
0x1358   :  { %2612 = vmatprep.subr.bf16.mxu0 %v2855_v3 }
0x135a   :  { %2450 = vmatmul.mubr.f32.vlgmr.msra.gmra.mrb[8].mxu0 %v2857_v10 }
0x135b   :  { %2614 = vmatpush3.bf16.msra.mxu0 %v3092_v60  ;;  %2471 = vmatprep.mubr.msk.f32.mxu0 %vm2856_vm1, %v2857_v10 }
0x135c   :  { %2615 = vmatprep.subr.bf16.mxu0 %v2855_v3 }
0x135f   :  { %2617 = vmatpush3.bf16.msra.mxu0 %v3101_v63 }
0x1360   :  { %2624 = vmatprep.subr.bf16.mxu0 %v2855_v3 }
0x1425   :  { %v944_v39 = vpop.f32.mrb[6].mxu0 }
0x1426   :  { %v949_v40 = vrot.slane %v944_v39, 2  ;;  %v2429_v41 = vpop.f32.mrb[7].mxu0 }
0x1428   :  { %v951_v42 = vadd.f32 %v949_v40, %v2976_v15 }
0x142a   :  { %2759 = vtanh.f32 %v951_v42  ;;  %v2183_v44 = vmul.f32 -1.442695, %v951_v42 }
0x142c   :  { %2761 = vpow2.f32 %v2183_v44 }
0x142d   :  { %v1154_v5 = vpop.f32.mrb[8].mxu0 }
0x142e   :  { %v2451_v6 = vpop.f32.mrb[9].mxu0 }
0x1434   :  { %v2760_v43 = vpop.eup %2759 }
0x1435   :  { %964 = vrot.lane.b32.xlu0 %v2760_v43, %s2858_s13 }
0x1436   :  { %v2762_v45 = vpop.eup %2761 }
0x1437   :  { %v955_v46 = vadd.f32 1.0, %v2762_v45 }
0x1439   :  { %2763 = vrcp.f32 %v955_v46 }
0x1443   :  { %v2764_v47 = vpop.eup %2763 }
0x1444   :  { %v962_v51 = vmul.f32 %v2764_v47, %v960_v50 }
0x14a7   :  { %v965_v48 = vpop.permute.xlu0 %964 }
0x14a8   :  { %v967_v49 = vmul.f32 %v2764_v47, %v965_v48 }
0x14aa   :  { %969 = vrot.lane.b32.xlu1 %v967_v49, %s2859_s3 }
0x14ae   :  { %1001 = vrot.lane.b32.xlu1 %v3027_v37, %s2859_s3  ;;  %v2592_v37 = vpack.c.bf16 %v989_v55, %v988_v54 }
0x14b0   :  { %2593 = vmatprep.subr.bf16.mxu1 %v2592_v37 }
0x14b1   :  { %2595 = vmatpush3.bf16.msra.mxu1 %v2592_v37 }
0x14b2   :  { %2597 = vmatprep.subr.bf16.mxu1 %v2596_v61 }
0x14b5   :  { %2599 = vmatpush3.bf16.msra.mxu1 %v2596_v61 }
0x14b6   :  { %2606 = vmatprep.subr.bf16.mxu1 %v2855_v3 }
0x151c   :  { %v970_v15 = vpop.permute.xlu1 %969 }
0x151d   :  { %v972_v52 = vadd.f32 %v970_v15, %v962_v51 }
0x151f   :  { %2765 = vtanh.f32 %v972_v52 }
0x1520   :  { %v1002_v53 = vpop.permute.xlu1 %1001 }
0x1521   :  { %2438 = vmatprep.mubr.msk.f32.mxu1 %vm136_vm2, %v1002_v53 }
0x1529   :  { %v2766_v0 = vpop.eup %2765 }
0x152a   :  { %975 = vrot.lane.b32.xlu0 %v2766_v0, %s2858_s13 }
0x159c   :  { %v976_v1 = vpop.permute.xlu0 %975 }
0x159d   :  { %v978_v2 = vmul.f32 %v2764_v47, %v976_v1 }
0x159f   :  { %v987_v12 = vsel %vm983_vm5, %v986_v36, %v978_v2 }
0x15a0   :  { %1003 = vrot.lane.b32.xlu0 %v987_v12, %s2859_s3 }
0x1612   :  { %v1004_v4 = vpop.permute.xlu0 %1003 }
0x1613   :  { %2439 = vmatmul.mubr.msk.f32.vlgmr.msra.gmra.mrb[10].mxu1 %vm136_vm2, %v1004_v4 }
0x1614   :  { %2608 = vmatpush3.bf16.msra.mxu1 %v3092_v60  ;;  %2460 = vmatprep.mubr.msk.f32.mxu1 %vm2856_vm1, %v2857_v10 }
0x1615   :  { %2609 = vmatprep.subr.bf16.mxu1 %v2855_v3 }
0x1618   :  { %2611 = vmatpush3.bf16.msra.mxu1 %v3101_v63 }
0x1619   :  { %2618 = vmatprep.subr.bf16.mxu1 %v2855_v3 }
0x16e6   :  { %v2440_v9 = vpop.f32.mrb[10].mxu1 }
0x16e7   :  { %v3127_v11 = vadd.f32 %v2440_v9, %v2184_v8  ;;  %v1075_v13 = vpop.f32.mrb[11].mxu1 }
0x16e8   :  { %v3129_v14 = vadd.f32 %v2184_v8, %v1075_v13 }
0x16ea   :  { %v1158_v16 = vadd.f32 %v1154_v5, %v3129_v14 }
0x16ec   :  { %2767 = vtanh.f32 %v1158_v16  ;;  %v2187_v19 = vmul.f32 -1.442695, %v1158_v16 }
0x16ee   :  { %2769 = vpow2.f32 %v2187_v19 }
0x16f6   :  { %v2768_v18 = vpop.eup %2767 }
0x16f7   :  { %1168 = vrot.lane.b32.xlu1 %v2768_v18, %s2858_s13 }
0x16f8   :  { %v2770_v20 = vpop.eup %2769 }
0x16f9   :  { %v1162_v21 = vadd.f32 1.0, %v2770_v20 }
0x16fb   :  { %2771 = vrcp.f32 %v1162_v21 }
0x1705   :  { %v2772_v22 = vpop.eup %2771 }
0x1706   :  { %v1166_v25 = vmul.f32 0.0, %v2772_v22 }
0x1769   :  { %v1169_v23 = vpop.permute.xlu1 %1168 }
0x176a   :  { %v1171_v24 = vmul.f32 %v2772_v22, %v1169_v23 }
0x176c   :  { %1173 = vrot.lane.b32.xlu0 %v1171_v24, %s2859_s3 }
0x17de   :  { %v1174_v26 = vpop.permute.xlu0 %1173 }
0x17df   :  { %v1176_v27 = vadd.f32 %v1174_v26, %v1166_v25 }
0x17e1   :  { %2773 = vtanh.f32 %v1176_v27  ;;  %v1270_v43 = vrot.slane %v1176_v27, 6 }
0x17eb   :  { %v2774_v28 = vpop.eup %2773 }
0x17ec   :  { %1179 = vrot.lane.b32.xlu1 %v2774_v28, %s2858_s13 }
0x185e   :  { %v1180_v29 = vpop.permute.xlu1 %1179 }
0x185f   :  { %v1182_v30 = vmul.f32 %v2772_v22, %v1180_v29 }
0x1861   :  { %1184 = vrot.lane.b32.xlu0 %v1182_v30, %s2859_s3 }
0x18d3   :  { %v3136_v31 = vpop.permute.xlu0 %1184 }
0x18d4   :  { %2461 = vmatmul.mubr.msk.f32.vlgmr.msra.gmra.mrb[12].mxu1 %vm136_vm2, %v3136_v31 }
0x18d5   :  { %2620 = vmatpush3.bf16.msra.mxu1 %v3092_v60  ;;  %2482 = vmatprep.mubr.msk.f32.mxu1 %vm2856_vm1, %v2857_v10 }
0x18d6   :  { %2621 = vmatprep.subr.bf16.mxu1 %v2855_v3 }
0x18d9   :  { %2623 = vmatpush3.bf16.msra.mxu1 %v3101_v63 }
0x18da   :  { %2630 = vmatprep.subr.bf16.mxu1 %v2855_v3 }
0x19a7   :  { %v1254_v32 = vpop.f32.mrb[12].mxu1 }
0x19a8   :  { %v1259_v33 = vrot.slane %v1254_v32, 6  ;;  %v2462_v17 = vpop.f32.mrb[13].mxu1 }
0x19aa   :  { %v1261_v34 = vadd.f32 %v1259_v33, %v3129_v14 }
0x19ac   :  { %2775 = vtanh.f32 %v1261_v34  ;;  %v2189_v36 = vmul.f32 -1.442695, %v1261_v34 }
0x19ae   :  { %2777 = vpow2.f32 %v2189_v36 }
0x19b6   :  { %v2776_v35 = vpop.eup %2775 }
0x19b7   :  { %1274 = vrot.lane.b32.xlu1 %v2776_v35, %s2858_s13 }
0x19b8   :  { %v2778_v38 = vpop.eup %2777 }
0x19b9   :  { %v1265_v39 = vadd.f32 1.0, %v2778_v38 }
0x19bb   :  { %2779 = vrcp.f32 %v1265_v39 }
0x19c5   :  { %v2780_v40 = vpop.eup %2779 }
0x19c6   :  { %v1272_v44 = vmul.f32 %v2780_v40, %v1270_v43 }
0x1a29   :  { %v1275_v41 = vpop.permute.xlu1 %1274 }
0x1a2a   :  { %v1277_v42 = vmul.f32 %v2780_v40, %v1275_v41 }
0x1a2c   :  { %1279 = vrot.lane.b32.xlu0 %v1277_v42, %s2859_s3 }
0x1a9e   :  { %v1280_v45 = vpop.permute.xlu0 %1279 }
0x1a9f   :  { %v1282_v46 = vadd.f32 %v1280_v45, %v1272_v44 }
0x1aa1   :  { %2781 = vtanh.f32 %v1282_v46  ;;  %v1377_v62 = vrot.slane %v1282_v46, 6 }
0x1aab   :  { %v2782_v47 = vpop.eup %2781 }
0x1aac   :  { %1285 = vrot.lane.b32.xlu1 %v2782_v47, %s2858_s13 }
0x1b1e   :  { %v1286_v48 = vpop.permute.xlu1 %1285 }
0x1b1f   :  { %v3150_v49 = vmul.f32 %v2780_v40, %v1286_v48 }
0x1b21   :  { %v1290_v50 = vrot.slane %v3150_v49, 2  ;;  %v1954_v49 = vld [vmem:[%s3391_s7 + $0x8] sm:$0xff] }
0x1b23   :  { %1291 = vrot.lane.b32.xlu0 %v1290_v50, %s2859_s3 }
0x1b95   :  { %v1292_v51 = vpop.permute.xlu0 %1291 }
0x1b96   :  { %2472 = vmatmul.mubr.msk.f32.vlgmr.msra.gmra.mrb[10].mxu0 %vm136_vm2, %v1292_v51 }
0x1b97   :  { %2626 = vmatpush3.bf16.msra.mxu0 %v3092_v60  ;;  %2493 = vmatprep.mubr.msk.f32.mxu0 %vm2856_vm1, %v2857_v10 }
0x1b98   :  { %2627 = vmatprep.subr.bf16.mxu0 %v2855_v3 }
0x1b9b   :  { %2629 = vmatpush3.bf16.msra.mxu0 %v3101_v63 }
0x1b9c   :  { %2636 = vmatprep.subr.bf16.mxu0 %v2855_v3 }
0x1c69   :  { %v1361_v15 = vpop.f32.mrb[10].mxu0 }
0x1c6a   :  { %v1366_v52 = vrot.slane %v1361_v15, 4  ;;  %v2473_v53 = vpop.f32.mrb[11].mxu0 }
0x1c6c   :  { %v1368_v54 = vadd.f32 %v1366_v52, %v3129_v14 }
0x1c6e   :  { %2783 = vtanh.f32 %v1368_v54  ;;  %v2191_v56 = vmul.f32 -1.442695, %v1368_v54 }
0x1c70   :  { %2785 = vpow2.f32 %v2191_v56 }
0x1c78   :  { %v2784_v55 = vpop.eup %2783 }
0x1c79   :  { %1381 = vrot.lane.b32.xlu1 %v2784_v55, %s2858_s13 }
0x1c7a   :  { %v2786_v37 = vpop.eup %2785 }
0x1c7b   :  { %v1372_v57 = vadd.f32 1.0, %v2786_v37 }
0x1c7d   :  { %2787 = vrcp.f32 %v1372_v57 }
0x1c87   :  { %v2788_v58 = vpop.eup %2787 }
0x1c88   :  { %v1379_v7 = vmul.f32 %v2788_v58, %v1377_v62 }
0x1ceb   :  { %v1382_v59 = vpop.permute.xlu1 %1381 }
0x1cec   :  { %v1384_v61 = vmul.f32 %v2788_v58, %v1382_v59 }
0x1cee   :  { %1386 = vrot.lane.b32.xlu0 %v1384_v61, %s2859_s3 }
0x1d60   :  { %v1387_v0 = vpop.permute.xlu0 %1386 }
0x1d61   :  { %v1389_v1 = vadd.f32 %v1387_v0, %v1379_v7 }
0x1d63   :  { %2789 = vtanh.f32 %v1389_v1  ;;  %v1484_v25 = vrot.slane %v1389_v1, 6 }
0x1d6d   :  { %v2790_v2 = vpop.eup %2789 }
0x1d6e   :  { %1392 = vrot.lane.b32.xlu1 %v2790_v2, %s2858_s13 }
0x1de0   :  { %v1393_v12 = vpop.permute.xlu1 %1392 }
0x1de1   :  { %v3167_v4 = vmul.f32 %v2788_v58, %v1393_v12 }
0x1de3   :  { %v1397_v5 = vrot.slane %v3167_v4, 4 }
0x1de5   :  { %1398 = vrot.lane.b32.xlu0 %v1397_v5, %s2859_s3 }
0x1e57   :  { %v1399_v6 = vpop.permute.xlu0 %1398 }
0x1e58   :  { %2483 = vmatmul.mubr.msk.f32.vlgmr.msra.gmra.mrb[14].mxu1 %vm136_vm2, %v1399_v6 }
0x1e59   :  { %2632 = vmatpush3.bf16.msra.mxu1 %v3092_v60  ;;  %2504 = vmatprep.mubr.msk.f32.mxu1 %vm2856_vm1, %v2857_v10 }
0x1e5a   :  { %2633 = vmatprep.subr.bf16.mxu1 %v2855_v3 }
0x1e5d   :  { %2635 = vmatpush3.bf16.msra.mxu1 %v3101_v63 }
0x1e5e   :  { %2642 = vmatprep.subr.bf16.mxu1 %v2855_v3 }
0x1f2b   :  { %v1468_v8 = vpop.f32.mrb[14].mxu1 }
0x1f2c   :  { %v1473_v9 = vrot.slane %v1468_v8, 2  ;;  %v2484_v13 = vpop.f32.mrb[15].mxu1 }
0x1f2e   :  { %v1475_v16 = vadd.f32 %v1473_v9, %v3129_v14 }
0x1f30   :  { %2791 = vtanh.f32 %v1475_v16  ;;  %v2193_v19 = vmul.f32 -1.442695, %v1475_v16 }
0x1f32   :  { %2793 = vpow2.f32 %v2193_v19 }
0x1f3a   :  { %v2792_v18 = vpop.eup %2791 }
0x1f3b   :  { %1488 = vrot.lane.b32.xlu1 %v2792_v18, %s2858_s13 }
0x1f3c   :  { %v2794_v20 = vpop.eup %2793 }
0x1f3d   :  { %v1479_v21 = vadd.f32 1.0, %v2794_v20 }
0x1f3f   :  { %2795 = vrcp.f32 %v1479_v21 }
0x1f49   :  { %v2796_v22 = vpop.eup %2795 }
0x1f4a   :  { %v1486_v26 = vmul.f32 %v2796_v22, %v1484_v25 }
0x1fad   :  { %v1489_v23 = vpop.permute.xlu1 %1488 }
0x1fae   :  { %v1491_v24 = vmul.f32 %v2796_v22, %v1489_v23 }
0x1fb0   :  { %1493 = vrot.lane.b32.xlu0 %v1491_v24, %s2859_s3 }
0x2022   :  { %v1494_v27 = vpop.permute.xlu0 %1493 }
0x2023   :  { %v1496_v28 = vadd.f32 %v1494_v27, %v1486_v26 }
0x2025   :  { %2797 = vtanh.f32 %v1496_v28  ;;  %v1588_v44 = vrot.slane %v1496_v28, 6 }
0x202f   :  { %v2798_v14 = vpop.eup %2797 }
0x2030   :  { %1499 = vrot.lane.b32.xlu1 %v2798_v14, %s2858_s13 }
0x20a2   :  { %v1500_v29 = vpop.permute.xlu1 %1499 }
0x20a3   :  { %v3184_v30 = vmul.f32 %v2796_v22, %v1500_v29 }
0x20a5   :  { %v1504_v32 = vrot.slane %v3184_v30, 6  ;;  %v2066_v30 = vld [vmem:[%s3393_s9 + $0x18] sm:$0xff] }
0x20a7   :  { %1505 = vrot.lane.b32.xlu0 %v1504_v32, %s2859_s3 }
0x2119   :  { %v1506_v33 = vpop.permute.xlu0 %1505 }
0x211a   :  { %2494 = vmatmul.mubr.msk.f32.vlgmr.msra.gmra.mrb[12].mxu0 %vm136_vm2, %v1506_v33 }
0x211b   :  { %2638 = vmatpush3.bf16.msra.mxu0 %v3092_v60  ;;  %2515 = vmatprep.mubr.msk.f32.mxu0 %vm2856_vm1, %v2857_v10 }
0x211c   :  { %2639 = vmatprep.subr.bf16.mxu0 %v2855_v3 }
0x211f   :  { %2641 = vmatpush3.bf16.msra.mxu0 %v3101_v63 }
0x21ed   :  { %v1575_v17 = vpop.f32.mrb[12].mxu0 }
0x21ee   :  { %v1579_v34 = vadd.f32 %v1575_v17, %v3127_v11  ;;  %v2495_v35 = vpop.f32.mrb[13].mxu0 }
0x21f0   :  { %2799 = vtanh.f32 %v1579_v34  ;;  %v2195_v38 = vmul.f32 -1.442695, %v1579_v34 }
0x21f2   :  { %2801 = vpow2.f32 %v2195_v38 }
0x21fa   :  { %v2800_v36 = vpop.eup %2799 }
0x21fb   :  { %1592 = vrot.lane.b32.xlu1 %v2800_v36, %s2858_s13 }
0x21fc   :  { %v2802_v39 = vpop.eup %2801 }
0x21fd   :  { %v1583_v40 = vadd.f32 1.0, %v2802_v39 }
0x21ff   :  { %2803 = vrcp.f32 %v1583_v40 }
0x2209   :  { %v2804_v41 = vpop.eup %2803 }
0x220a   :  { %v1590_v45 = vmul.f32 %v2804_v41, %v1588_v44 }
0x226d   :  { %v1593_v42 = vpop.permute.xlu1 %1592 }
0x226e   :  { %v1595_v43 = vmul.f32 %v2804_v41, %v1593_v42 }
0x2270   :  { %1597 = vrot.lane.b32.xlu0 %v1595_v43, %s2859_s3 }
0x22e2   :  { %v1598_v46 = vpop.permute.xlu0 %1597 }
0x22e3   :  { %v1600_v47 = vadd.f32 %v1598_v46, %v1590_v45 }
0x22e5   :  { %2805 = vtanh.f32 %v1600_v47 }
0x22ef   :  { %v2806_v48 = vpop.eup %2805 }
0x22f0   :  { %1603 = vrot.lane.b32.xlu1 %v2806_v48, %s2858_s13 }
0x2362   :  { %v1604_v51 = vpop.permute.xlu1 %1603 }
0x2363   :  { %v1606_v15 = vmul.f32 %v2804_v41, %v1604_v51  ;;  %v1970_v51 = vld [vmem:[%s3391_s7 + $0x88] sm:$0xff] }
0x2365   :  { %1608 = vrot.lane.b32.xlu0 %v1606_v15, %s2859_s3  ;;  %v1953_v15 = vld [vmem:[%s3391_s7] sm:$0xff] }
0x23d7   :  { %v3201_v52 = vpop.permute.xlu0 %1608 }
0x23d8   :  { %2505 = vmatmul.mubr.msk.f32.vlgmr.msra.gmra.mrb[16].mxu1 %vm136_vm2, %v3201_v52 }
0x23d9   :  { %2644 = vmatpush3.bf16.msra.mxu1 %v3092_v60  ;;  %2526 = vmatprep.mubr.msk.f32.mxu1 %vm2856_vm1, %v2857_v10 }
0x23da   :  { %2645 = vmatprep.subr.bf16.mxu1 %v2855_v3 }
0x23dd   :  { %2647 = vmatpush3.bf16.msra.mxu1 %v3101_v63  ;;  %v1694_v63 = vrot.slane %v1600_v47, 6 }
0x23de   :  { %2680 = vmatprep.subr.bf16.mxu1 %v2855_v3 }
0x24ab   :  { %v1678_v53 = vpop.f32.mrb[16].mxu1 }
0x24ac   :  { %v1683_v54 = vrot.slane %v1678_v53, 6  ;;  %v2506_v55 = vpop.f32.mrb[17].mxu1 }
0x24ad   :  { %v2650_v55 = vpack.c.bf16 %v1954_v49, %v1953_v15 }
0x24ae   :  { %v1685_v56 = vadd.f32 %v1683_v54, %v3127_v11  ;;  %v1972_v54 = vld [vmem:[%s3391_s7 + $0x98] sm:$0xff] }
0x24b0   :  { %2807 = vtanh.f32 %v1685_v56  ;;  %v2197_v57 = vmul.f32 -1.442695, %v1685_v56 }
0x24b2   :  { %2809 = vpow2.f32 %v2197_v57  ;;  %v1956_v57 = vld [vmem:[%s3391_s7 + $0x18] sm:$0xff] }
0x24ba   :  { %v2808_v37 = vpop.eup %2807 }
0x24bb   :  { %1698 = vrot.lane.b32.xlu1 %v2808_v37, %s2858_s13  ;;  %v1955_v37 = vld [vmem:[%s3391_s7 + $0x10] sm:$0xff] }
0x24bc   :  { %v2810_v60 = vpop.eup %2809 }
0x24bd   :  { %v1689_v58 = vadd.f32 1.0, %v2810_v60  ;;  %v1973_v60 = vld [vmem:[%s3391_s7 + $0xa0] sm:$0xff] }
0x24bf   :  { %2811 = vrcp.f32 %v1689_v58  ;;  %v1974_v58 = vld [vmem:[%s3391_s7 + $0xa8] sm:$0xff] }
0x24c9   :  { %v2812_v59 = vpop.eup %2811 }
0x24ca   :  { %v1696_v7 = vmul.f32 %v2812_v59, %v1694_v63  ;;  %v1958_v63 = vld [vmem:[%s3391_s7 + $0x28] sm:$0xff] }
0x252d   :  { %v1699_v61 = vpop.permute.xlu1 %1698 }
0x252e   :  { %v1701_v62 = vmul.f32 %v2812_v59, %v1699_v61  ;;  %v2656_v61 = vpack.c.bf16 %v1974_v58, %v1973_v60 }
0x2530   :  { %1703 = vrot.lane.b32.xlu0 %v1701_v62, %s2859_s3  ;;  %v1957_v62 = vld [vmem:[%s3391_s7 + $0x20] sm:$0xff] }
0x25a2   :  { %v1704_v0 = vpop.permute.xlu0 %1703 }
0x25a3   :  { %v1706_v1 = vadd.f32 %v1704_v0, %v1696_v7  ;;  %v1975_v7 = vld [vmem:[%s3391_s7 + $0xb0] sm:$0xff]  ;;  %v1976_v0 = vld [vmem:[%s3391_s7 + $0xb8] sm:$0xff] }
0x25a5   :  { %2813 = vtanh.f32 %v1706_v1  ;;  %v1801_v27 = vrot.slane %v1706_v1, 6  ;;  %v2658_v1 = vpack.c.bf16 %v1958_v63, %v1957_v62 }
0x25af   :  { %v2814_v2 = vpop.eup %2813 }
0x25b0   :  { %1709 = vrot.lane.b32.xlu1 %v2814_v2, %s2858_s13  ;;  %v2660_v2 = vpack.c.bf16 %v1976_v0, %v1975_v7 }
0x2622   :  { %v1710_v12 = vpop.permute.xlu1 %1709 }
0x2623   :  { %v1712_v6 = vmul.f32 %v2812_v59, %v1710_v12  ;;  %v2654_v59 = vpack.c.bf16 %v1956_v57, %v1955_v37  ;;  %v1959_v12 = vld [vmem:[%s3391_s7 + $0x30] sm:$0xff] }
0x2625   :  { %v1714_v8 = vrot.slane %v1712_v6, 2  ;;  %v1960_v6 = vld [vmem:[%s3391_s7 + $0x38] sm:$0xff] }
0x2627   :  { %1715 = vrot.lane.b32.xlu0 %v1714_v8, %s2859_s3 }
0x2699   :  { %v1716_v9 = vpop.permute.xlu0 %1715 }
0x269a   :  { %2516 = vmatmul.mubr.msk.f32.vlgmr.msra.gmra.mrb[14].mxu0 %vm136_vm2, %v1716_v9  ;;  %v1978_v9 = vld [vmem:[%s3391_s7 + $0xc8] sm:$0xff] }
0x276d   :  { %v1785_v13 = vpop.f32.mrb[14].mxu0 }
0x276e   :  { %v1790_v16 = vrot.slane %v1785_v13, 4  ;;  %v2517_v18 = vpop.f32.mrb[15].mxu0  ;;  %v2662_v13 = vpack.c.bf16 %v1960_v6, %v1959_v12 }
0x276f   :  { %v1961_v18 = vld [vmem:[%s3391_s7 + $0x40] sm:$0xff] }
0x2770   :  { %v1792_v19 = vadd.f32 %v1790_v16, %v3127_v11 }
0x2772   :  { %2815 = vtanh.f32 %v1792_v19  ;;  %v2199_v21 = vmul.f32 -1.442695, %v1792_v19  ;;  %v1962_v19 = vld [vmem:[%s3391_s7 + $0x48] sm:$0xff] }
0x2774   :  { %2817 = vpow2.f32 %v2199_v21  ;;  %v1980_v21 = vld [vmem:[%s3391_s7 + $0xd8] sm:$0xff] }
0x277c   :  { %v2816_v20 = vpop.eup %2815 }
0x277d   :  { %1805 = vrot.lane.b32.xlu1 %v2816_v20, %s2858_s13  ;;  %v1979_v20 = vld [vmem:[%s3391_s7 + $0xd0] sm:$0xff] }
0x277e   :  { %v2818_v22 = vpop.eup %2817 }
0x277f   :  { %v1796_v23 = vadd.f32 1.0, %v2818_v22  ;;  %v2666_v22 = vpack.c.bf16 %v1962_v19, %v1961_v18 }
0x2781   :  { %2819 = vrcp.f32 %v1796_v23  ;;  %v2668_v23 = vpack.c.bf16 %v1980_v21, %v1979_v20 }
0x278b   :  { %v2820_v24 = vpop.eup %2819 }
0x278c   :  { %v1803_v28 = vmul.f32 %v2820_v24, %v1801_v27 }
0x27ef   :  { %v1806_v25 = vpop.permute.xlu1 %1805 }
0x27f0   :  { %v1808_v26 = vmul.f32 %v2820_v24, %v1806_v25  ;;  %v1964_v25 = vld [vmem:[%s3391_s7 + $0x58] sm:$0xff] }
0x27f2   :  { %1810 = vrot.lane.b32.xlu0 %v1808_v26, %s2859_s3 }
0x2864   :  { %v1811_v14 = vpop.permute.xlu0 %1810 }
0x2865   :  { %v3220_v29 = vadd.f32 %v1811_v14, %v1803_v28  ;;  %v1981_v14 = vld [vmem:[%s3391_s7 + $0xe0] sm:$0xff] }
0x2867   :  { %2821 = vtanh.f32 %v3220_v29  ;;  %v1908_v27 = vrot.slane %v3220_v29, 6  ;;  %v1966_v29 = vld [vmem:[%s3391_s7 + $0x68] sm:$0xff] }
0x2871   :  { %v2822_v33 = vpop.eup %2821 }
0x2872   :  { %1816 = vrot.lane.b32.xlu1 %v2822_v33, %s2858_s13  ;;  %v1982_v33 = vld [vmem:[%s3391_s7 + $0xe8] sm:$0xff] }
0x28e4   :  { %v1817_v17 = vpop.permute.xlu1 %1816 }
0x28e5   :  { %v3224_v34 = vmul.f32 %v2820_v24, %v1817_v17  ;;  %v1963_v24 = vld [vmem:[%s3391_s7 + $0x50] sm:$0xff] }
0x28e6   :  { %v2670_v26 = vpack.c.bf16 %v1964_v25, %v1963_v24 }
0x28e7   :  { %v1821_v35 = vrot.slane %v3224_v34, 4 }
0x28e9   :  { %1822 = vrot.lane.b32.xlu0 %v1821_v35, %s2859_s3 }
0x295b   :  { %v1823_v36 = vpop.permute.xlu0 %1822 }
0x295c   :  { %2527 = vmatmul.mubr.msk.f32.vlgmr.msra.gmra.mrb[18].mxu1 %vm136_vm2, %v1823_v36  ;;  %v2672_v36 = vpack.c.bf16 %v1982_v33, %v1981_v14 }
0x295d   :  { %2537 = vmatprep.mubr.msk.f32.mxu1 %vm2856_vm1, %v2857_v10  ;;  %v2693_v10 = vpack.i.bf16 %v1290_v50, %v1714_v8  ;;  %v1971_v50 = vld [vmem:[%s3391_s7 + $0x90] sm:$0xff]  ;;  %v1977_v8 = vld [vmem:[%s3391_s7 + $0xc0] sm:$0xff] }
0x295e   :  { %v2652_v56 = vpack.c.bf16 %v1972_v54, %v1971_v50  ;;  %v2664_v16 = vpack.c.bf16 %v1978_v9, %v1977_v8 }
0x2a2f   :  { %v1892_v38 = vpop.f32.mrb[18].mxu1 }
0x2a30   :  { %v1897_v39 = vrot.slane %v1892_v38, 2  ;;  %v2528_v40 = vpop.f32.mrb[19].mxu1  ;;  %v1965_v38 = vld [vmem:[%s3391_s7 + $0x60] sm:$0xff] }
0x2a31   :  { %v2674_v40 = vpack.c.bf16 %v1966_v29, %v1965_v38 }
0x2a32   :  { %v1899_v41 = vadd.f32 %v1897_v39, %v3127_v11  ;;  %v1969_v11 = vld [vmem:[%s3391_s7 + $0x80] sm:$0xff] }
0x2a33   :  { %v2648_v53 = vpack.c.bf16 %v1970_v51, %v1969_v11 }
0x2a34   :  { %2823 = vtanh.f32 %v1899_v41  ;;  %v2201_v43 = vmul.f32 -1.442695, %v1899_v41  ;;  %v1983_v41 = vld [vmem:[%s3391_s7 + $0xf0] sm:$0xff] }
0x2a35   :  { %2649 = vmatprep.subr.bf16.mxu0 %v2648_v53 }
0x2a36   :  { %2825 = vpow2.f32 %v2201_v43  ;;  %2651 = vmatpush3.bf16.msra.mxu0 %v2650_v55 }
0x2a37   :  { %2653 = vmatprep.subr.bf16.mxu0 %v2652_v56 }
0x2a3a   :  { %2655 = vmatpush3.bf16.msra.mxu0 %v2654_v59  ;;  %v2202_v59 = vld [vmem:[%s3392_s8] ss:$0 sm:$0xff] }
0x2a3b   :  { %2657 = vmatprep.subr.bf16.mxu0 %v2656_v61 }
0x2a3e   :  { %v2824_v42 = vpop.eup %2823  ;;  %2659 = vmatpush3.bf16.msra.mxu0 %v2658_v1 }
0x2a3f   :  { %1912 = vrot.lane.b32.xlu1 %v2824_v42, %s2858_s13  ;;  %2661 = vmatprep.subr.bf16.mxu0 %v2660_v2  ;;  %v1984_v42 = vld [vmem:[%s3391_s7 + $0xf8] sm:$0xff] }
0x2a40   :  { %v2826_v44 = vpop.eup %2825  ;;  %v2676_v43 = vpack.c.bf16 %v1984_v42, %v1983_v41 }
0x2a41   :  { %v1903_v45 = vadd.f32 1.0, %v2826_v44  ;;  %v1967_v44 = vld [vmem:[%s3391_s7 + $0x70] sm:$0xff] }
0x2a42   :  { %2663 = vmatpush3.bf16.msra.mxu0 %v2662_v13 }
0x2a43   :  { %2827 = vrcp.f32 %v1903_v45  ;;  %2665 = vmatprep.subr.bf16.mxu0 %v2664_v16  ;;  %v1968_v45 = vld [vmem:[%s3391_s7 + $0x78] sm:$0xff] }
0x2a46   :  { %2667 = vmatpush3.bf16.msra.mxu0 %v2666_v22 }
0x2a47   :  { %2669 = vmatprep.subr.bf16.mxu0 %v2668_v23 }
0x2a4a   :  { %2671 = vmatpush3.bf16.msra.mxu0 %v2670_v26 }
0x2a4b   :  { %2673 = vmatprep.subr.bf16.mxu0 %v2672_v36 }
0x2a4d   :  { %v3235_v46 = vpop.eup %2827 }
0x2a4e   :  { %v1910_v28 = vmul.f32 %v3235_v46, %v1908_v27  ;;  %2675 = vmatpush3.bf16.msra.mxu0 %v2674_v40 }
0x2a4f   :  { %2677 = vmatprep.subr.bf16.mxu0 %v2676_v43 }
0x2ab1   :  { %v1913_v47 = vpop.permute.xlu1 %1912 }
0x2ab2   :  { %v1915_v48 = vmul.f32 %v3235_v46, %v1913_v47  ;;  %v2678_v47 = vpack.c.bf16 %v1968_v45, %v1967_v44 }
0x2ab4   :  { %1917 = vrot.lane.b32.xlu0 %v1915_v48, %s2859_s3  ;;  %2679 = vmatpush3.bf16.msra.mxu0 %v2678_v47 }
0x2ab8   :  { %2694 = vrot.lane.b32.xlu0 %v2693_v10, %s2858_s13  ;;  %v2698_v10 = vpack.i.bf16 %v1397_v5, %v1821_v35 }
0x2b26   :  { %v1918_v17 = vpop.permute.xlu0 %1917 }
0x2b27   :  { %v1920_v39 = vadd.f32 %v1918_v17, %v1910_v28 }
0x2b29   :  { %2829 = vtanh.f32 %v1920_v39 }
0x2b2a   :  { %v2695_v11 = vpop.permute.xlu0 %2694 }
0x2b2b   :  { %v2697_v15 = vunpack.i.h.bf16 %v2695_v11  ;;  %v2696_v53 = vunpack.i.l.bf16 %v2695_v11 }
0x2b2d   :  { %v1945_v56 = vsel %vm136_vm2, %v3136_v31, %v2697_v15  ;;  %v1950_v4 = vsel %vm136_vm2, %v3201_v52, %v2696_v53  ;;  %v2064_v31 = vld [vmem:[%s3393_s9 + $0x8] sm:$0xff]  ;;  %v2065_v52 = vld [vmem:[%s3393_s9 + $0x10] sm:$0xff] }
0x2b33   :  { %v2830_v48 = vpop.eup %2829 }
0x2b34   :  { %1923 = vrot.lane.b32.xlu1 %v2830_v48, %s2858_s13 }
0x2b38   :  { %2699 = vrot.lane.b32.xlu1 %v2698_v10, %s2860_s21 }
0x2ba6   :  { %v1924_v51 = vpop.permute.xlu1 %1923 }
0x2ba7   :  { %v1926_v49 = vmul.f32 %v3235_v46, %v1924_v51  ;;  %v2063_v46 = vld [vmem:[%s3393_s9] sm:$0xff]  ;;  %s2861_s9 = smov [#allocation2]  }
0x2ba8   :  { %v2681_v60 = vpack.c.bf16 %v2064_v31, %v2063_v46  ;;  %s2158_s6 = sshll.u32 %s2861_s9, 4  ;;  %s2159_s6 = int_to_ptr.vmem [resolvable:$true] %s2158_s6 }
0x2ba9   :  { %v1943_v5 = vrot.slane %v1926_v49, 6  ;;  %s2831_s8 = scalar_lea.vmem %s2159_s6, 32  ;;  %p2836_p1 = scmp.lt.s32.totalorder %s2159_s6, %s2159_s6 }
0x2baa   :  { %v2700_v50 = vpop.permute.xlu1 %2699  ;;  %2682 = vmatpush3.bf16.msra.mxu1 %v2681_v60  ;;  %p2832_p0 = scmp.ne.s32.totalorder %s2159_s6, %s2831_s8  ;;  %p2837_p2 = scmp.lt.s32.totalorder %s2831_s8, %s2831_s8 }
0x2bab   :  { %v2702_v54 = vunpack.i.h.bf16 %v2700_v50  ;;  %v2701_v55 = vunpack.i.l.bf16 %v2700_v50  ;;  %2683 = vmatprep.subr.bf16.mxu1 %v2855_v3  ;;  %v2203_v3 = vld [vmem:[%s3394_s10] ss:$0 sm:$0xff] }
0x2bac   :  { %p2838_p3 = por %p2837_p2, %p2836_p1 }
0x2bad   :  { %v1947_v34 = vsel %vm1946_vm6, %v1945_v56, %v2702_v54  ;;  %v1951_v35 = vsel %vm1946_vm6, %v1950_v4, %v2701_v55 }
0x2bae   :  { %v1952_v37 = vsel %vm1948_vm7, %v1951_v35, %v1943_v5  ;;  %v1949_v57 = vsel %vm1948_vm7, %v1947_v34, %v1504_v32  ;;  %v2684_v32 = vpack.c.bf16 %v2066_v30, %v2065_v52  ;;  %p2839_p4 = pnand %p2838_p3, %p2832_p0 }
0x2baf   :  { %2056 = vmatprep.mubr.f32.mxu0 %v1952_v37 }
0x2bb0   :  { %2057 = vmatmul.mubr.f32.vlgmr.msra.gmra.mrb[16].mxu0 %v1949_v57  ;;  %2685 = vmatpush3.bf16.msra.mxu1 %v2684_v32 }
0x2c83   :  { %v2327_v58 = vpop.f32.mrb[16].mxu0 }
0x2c84   :  { %v2328_v61 = vpop.f32.mrb[17].mxu0 }
0x2c85   :  { %v2329_v62 = vadd.f32 %v2328_v61, %v2327_v58 }
0x2c87   :  { %v2059_v63 = vadd.f32 %v2329_v62, %v2202_v59 }
0x2c89   :  { %v2062_v7 = vmax.f32 %v2059_v63, 0.0 }
0x2c8b   :  { %2538 = vmatmul.mubr.msk.f32.vlgmr.msra.gmra.mrb[20].mxu1 %vm136_vm2, %v2062_v7 }
0x2d5e   :  { %v2143_v0 = vpop.f32.mrb[20].mxu1 }
0x2d5f   :  { %v2144_v1 = vadd.f32 %v2203_v3, %v2143_v0  ;;  %v2539_v2 = vpop.f32.mrb[21].mxu1 }
0x2d61   :  { %v2148_v12 = vmul.f32 0.01, %v2144_v1  ;;  %vm2147_vm8 = vcmp.ge.f32.partialorder %v2144_v1, 0.0 }
0x2d63   :  { %v2149_v6 = vsel %vm2147_vm8, %v2144_v1, %v2148_v12 }
0x2d64   :  { %2151 = vst.msk [vmem:[#allocation2] sm:$0x3] %vm2150_vm9, %v2149_v6 }
0x2d65   :  { %2842 = shalt.err (!%p2839_p4)
}
0x2d66   :  { %s2843_s30 = scalar_lea.hbm %s3395_s11, 32 }
0x2d67   :  { %p2844_p5 = scmp.ne.s32.totalorder %s3395_s11, %s2843_s30  ;;  %p2847_p6 = scmp.lt.u32.totalorder %s2843_s30, %s3395_s11 }
0x2d69   :  { %p2849_p7 = pnand %p2847_p6, %p2844_p5 }
0x2d6b   :  { %2852 = shalt.err (!%p2849_p7)
}
0x2d6c   :  { %2161 = dma.vmem_to_hbm [thread:$0]  %s2159_s6, 32, %s3395_s11, [#allocation3]  }
0x2d6d   :  { %2853 = dma.done.wait [#allocation3], 32  }
0x2d6e   :  { %2854 = vsyncadd [#allocation3], 4294967264 }
0x2d6f   :  { %2165 = vsyncpa [#allocation3], 1 }

</bundles_post_ra>
